<compile_context>
chip_gen: v7x
topology: tpu7x:2x2x1
jax: 0.10.0
libtpu: 0.0.40
codegen_flags: <defaults>
</compile_context>

<pallas_src>
import functools

import numpy as np
import jax
import jax.numpy as jnp
from jax import lax
from jax.experimental import pallas as pl
from jax.experimental.pallas import tpu as pltpu


def _round_up(x, m):
    return ((x + m - 1) // m) * m


def _pick_tb(T, cap=8):
    # Largest divisor of T that is <= cap (keeps the kernel guard-free).
    for tb in range(min(T, cap), 0, -1):
        if T % tb == 0:
            return tb
    return 1


# ----------------------------------------------------------------------------
# Pallas kernel: grid over time *blocks*; hidden state carried in VMEM scratch.
# ----------------------------------------------------------------------------
def _convgru_seq_kernel(x_ref, h0_ref, mask_ref, wg_ref, wc_ref, bg_ref,
                        out_ref, h_scr, *, Tb, BHp, WCp, seq2seq):
    # x_ref   : (Tb, BHp, WCp)      bf16, Tb frames, zero-padded rows/lanes
    # h0_ref  : (BHp, WCp)          f32, initial hidden state (padded layout)
    # mask_ref: (BHp, WCp)          f32, 1.0 on valid rows/lanes else 0.0
    # wg_ref  : (3, 2*WCp, 3*WCp)   bf16, fused gate weights, cols = [r | z | c_x]
    # wc_ref  : (3, WCp, WCp)       bf16, candidate (r*h) weights
    # bg_ref  : (1, 3*WCp)          f32, fused bias row [b_r | b_z | b_c]
    # out_ref : (Tb or 1, BHp, WCp) bf16, new hidden states (padded layout)
    # h_scr   : (BHp, WCp)          f32 VMEM scratch, carried across grid steps

    @pl.when(pl.program_id(0) == 0)
    def _init():
        h_scr[...] = h0_ref[...]

    mask = mask_ref[...]
    bg = bg_ref[...]
    wg0, wg1, wg2 = wg_ref[0], wg_ref[1], wg_ref[2]
    wc0, wc1, wc2 = wc_ref[0], wc_ref[1], wc_ref[2]
    h = h_scr[...]                                   # f32, pad rows/lanes are 0

    def dotf(a, w):
        return jnp.dot(a, w, preferred_element_type=jnp.float32)

    def tap_above(v):      # v[i-1] at row i  (pad rows supply the zero padding)
        return pltpu.roll(v, 1, 0)

    def tap_below(v):      # v[i+1] at row i
        return pltpu.roll(v, BHp - 1, 0)

    for i in range(Tb):                              # Tb is small & static
        xb = x_ref[i]                                # (BHp, WCp) bf16
        hb = h.astype(jnp.bfloat16)
        xh = jnp.concatenate([xb, hb], axis=-1)      # (BHp, 2*WCp) bf16

        # Fused 3x3 gate conv: full-slab dot per ky, realign f32 results on XLU.
        g = (tap_above(dotf(xh, wg0)) + dotf(xh, wg1)
             + tap_below(dotf(xh, wg2)) + bg)        # (BHp, 3*WCp) f32

        r = jax.nn.sigmoid(g[:, :WCp])
        rh = (r * h).astype(jnp.bfloat16)            # exactly 0 on pad rows/lanes

        crh = (tap_above(dotf(rh, wc0)) + dotf(rh, wc1)
               + tap_below(dotf(rh, wc2)))           # (BHp, WCp) f32

        z = jax.nn.sigmoid(g[:, WCp:2 * WCp])
        c = jnp.tanh(g[:, 2 * WCp:] + crh)           # bias b_hh already in g
        h = ((1.0 - z) * h + z * c) * mask           # keep pad rows/lanes at 0

        if seq2seq:
            out_ref[i] = h.astype(out_ref.dtype)

    if not seq2seq:
        out_ref[0] = h.astype(out_ref.dtype)         # resident block, 1 writeback
    h_scr[...] = h


def _convgru_pallas(x_slabs, h0_slab, mask_slab, wg, wc, bg, *,
                    BHp, WCp, Tb, seq2seq):
    T = x_slabs.shape[0]
    nsteps = T // Tb
    T_out = T if seq2seq else 1
    Tb_out = Tb if seq2seq else 1
    out_map = (lambda t: (t, 0, 0)) if seq2seq else (lambda t: (0, 0, 0))

    kernel = functools.partial(_convgru_seq_kernel, Tb=Tb, BHp=BHp, WCp=WCp,
                               seq2seq=seq2seq)

    # Explicit VMEM budget (v7x has only 64 MiB physical VMEM).
    vmem_bytes = (2 * Tb * BHp * WCp * 2            # x blocks (bf16, dbl buf)
                  + 2 * Tb_out * BHp * WCp * 2      # out blocks (bf16, dbl buf)
                  + 2 * (int(wg.size) + int(wc.size)) * 2   # weight slabs
                  + 4 * BHp * WCp * 4               # h0, mask, h_scr, slack
                  + int(bg.size) * 4
                  + 8 * BHp * 3 * WCp * 4)          # f32 temporaries
    vmem_limit = int(min(60 * 2**20, max(2 * vmem_bytes, 8 * 2**20)))

    return pl.pallas_call(
        kernel,
        out_shape=jax.ShapeDtypeStruct((T_out, BHp, WCp), jnp.bfloat16),
        grid_spec=pltpu.PrefetchScalarGridSpec(
            num_scalar_prefetch=0,
            grid=(nsteps,),
            in_specs=[
                pl.BlockSpec((Tb, BHp, WCp), lambda t: (t, 0, 0)),       # x
                pl.BlockSpec((BHp, WCp), lambda t: (0, 0)),              # h0
                pl.BlockSpec((BHp, WCp), lambda t: (0, 0)),              # mask
                pl.BlockSpec((3, 2 * WCp, 3 * WCp), lambda t: (0, 0, 0)),  # wg
                pl.BlockSpec((3, WCp, WCp), lambda t: (0, 0, 0)),        # wc
                pl.BlockSpec((1, 3 * WCp), lambda t: (0, 0)),            # bias
            ],
            out_specs=pl.BlockSpec((Tb_out, BHp, WCp), out_map),
            scratch_shapes=[pltpu.VMEM((BHp, WCp), jnp.float32)],
        ),
        compiler_params=pltpu.CompilerParams(
            # time axis carries the recurrence through VMEM scratch -> sequential
            dimension_semantics=("arbitrary",),
            vmem_limit_bytes=vmem_limit),
    )(x_slabs, h0_slab, mask_slab, wg, wc, bg)


# ----------------------------------------------------------------------------
# Parameter construction / preprocessing (banded, fused, lane-padded slabs).
# ----------------------------------------------------------------------------
def init_convgru_params(key, C):
    # Deterministic init mimicking Conv2d default (uniform +/- 1/sqrt(fan_in)).
    C2 = 2 * C
    k = jax.random.split(key, 4)
    bnd = 1.0 / np.sqrt(C2 * 9)
    w_ih = jax.random.uniform(k[0], (3, 3, C2, C2), jnp.float32, -bnd, bnd)  # HWIO
    b_ih = jax.random.uniform(k[1], (C2,), jnp.float32, -bnd, bnd)
    w_hh = jax.random.uniform(k[2], (3, 3, C2, C), jnp.float32, -bnd, bnd)   # HWIO
    b_hh = jax.random.uniform(k[3], (C,), jnp.float32, -bnd, bnd)
    return w_ih, b_ih, w_hh, b_hh


def _band_into(dst, w, row_base, col_base, W):
    # dst: (3, rows, cols); w: (3, 3, Cin, Cout) HWIO
    kh, kw, Cin, Cout = w.shape
    for ky in range(kh):
        for xo in range(W):
            for kx in range(kw):
                xi = xo + kx - 1
                if 0 <= xi < W:
                    dst[ky,
                        row_base + xi * Cin: row_base + (xi + 1) * Cin,
                        col_base + xo * Cout: col_base + (xo + 1) * Cout] = w[ky, kx]


def preprocess_params(params, C, W):
    """Build fused, banded, lane-padded bf16 weight slabs + fused bias row."""
    w_ih, b_ih, w_hh, b_hh = params
    w_ih = np.asarray(w_ih, np.float32)
    w_hh = np.asarray(w_hh, np.float32)
    b_ih = np.asarray(b_ih, np.float32)
    b_hh = np.asarray(b_hh, np.float32)
    WC = W * C
    WCp = max(128, _round_up(WC, 128))

    # Fused gate weights: rows = [x | h] (K=2*WCp), cols = [r | z | c_x] (N=3*WCp)
    wg = np.zeros((3, 2 * WCp, 3 * WCp), np.float32)
    _band_into(wg, w_ih[:, :, :C, :C], 0, 0, W)            # x -> r
    _band_into(wg, w_ih[:, :, C:, :C], WCp, 0, W)          # h -> r
    _band_into(wg, w_ih[:, :, :C, C:], 0, WCp, W)          # x -> z
    _band_into(wg, w_ih[:, :, C:, C:], WCp, WCp, W)        # h -> z
    _band_into(wg, w_hh[:, :, :C, :], 0, 2 * WCp, W)       # x -> candidate (c_x)

    # Candidate (r*h) weights.
    wc = np.zeros((3, WCp, WCp), np.float32)
    _band_into(wc, w_hh[:, :, C:, :], 0, 0, W)             # (r*h) -> candidate

    bg = np.zeros((1, 3 * WCp), np.float32)
    bg[0, 0:WC] = np.tile(b_ih[:C], W)
    bg[0, WCp:WCp + WC] = np.tile(b_ih[C:], W)
    bg[0, 2 * WCp:2 * WCp + WC] = np.tile(b_hh, W)

    return (jnp.asarray(wg, jnp.bfloat16),
            jnp.asarray(wc, jnp.bfloat16),
            jnp.asarray(bg, jnp.float32))


# ----------------------------------------------------------------------------
# Forward wrapper (mirrors ConvGRU.forward); one pallas_call per sequence.
# ----------------------------------------------------------------------------
@functools.partial(jax.jit, static_argnames=("C", "seq2seq"))
def conv_gru_forward(prep, x, h=None, *, C, seq2seq=False):
    """x: (B,C,H,W) or (B,T,C,H,W); returns (o, h) like the PyTorch module."""
    wg, wc, bg = prep
    time_series = (x.ndim == 5)
    if h is None:
        h = jnp.zeros((x.shape[0],) + tuple(x.shape[-3:]), x.dtype)

    B = x.shape[0]
    Hs, Ws = x.shape[-2], x.shape[-1]
    WC = Ws * C
    WCp = max(128, _round_up(WC, 128))
    Hp = _round_up(Hs + 2, 8)          # >=1 zero pad row each side per batch
    lead = (Hp - Hs) // 2
    trail = Hp - Hs - lead
    BHp = B * Hp

    xt = x if time_series else x[:, None]                 # (B, T, C, H, W)
    T = xt.shape[1]
    Tb = _pick_tb(T)
    sq = bool(seq2seq) and time_series

    # NCHW -> padded row slabs, done ONCE for the whole sequence.
    xr = jnp.transpose(xt, (1, 0, 3, 4, 2)).reshape(T, B, Hs, WC)
    xr = jnp.pad(xr, ((0, 0), (0, 0), (lead, trail), (0, WCp - WC)))
    xr = xr.reshape(T, BHp, WCp).astype(jnp.bfloat16)

    hr = jnp.transpose(h, (0, 2, 3, 1)).reshape(B, Hs, WC).astype(jnp.float32)
    hr = jnp.pad(hr, ((0, 0), (lead, trail), (0, WCp - WC))).reshape(BHp, WCp)

    mask = jnp.pad(jnp.ones((B, Hs, WC), jnp.float32),
                   ((0, 0), (lead, trail), (0, WCp - WC))).reshape(BHp, WCp)

    out = _convgru_pallas(xr, hr, mask, wg, wc, bg,
                          BHp=BHp, WCp=WCp, Tb=Tb, seq2seq=sq)  # (T|1, BHp, WCp)

    def slabs_to_nchw(slabs):                              # (n,BHp,WCp)->(n,B,C,H,W)
        y = slabs.reshape(-1, B, Hp, WCp)[:, :, lead:lead + Hs, :WC]
        y = y.reshape(-1, B, Hs, Ws, C)
        return jnp.transpose(y, (0, 1, 4, 2, 3)).astype(x.dtype)

    if sq:
        frames = slabs_to_nchw(out)                        # (T, B, C, H, W)
        h_last = frames[-1]
        o = jnp.transpose(frames, (1, 0, 2, 3, 4))         # (B, T, C, H, W)
    else:
        h_last = slabs_to_nchw(out)[0]
        o = h_last
    return o, h_last


# ----------------------------------------------------------------------------
# Pure-JAX reference (lax.conv, f32 HIGHEST) for validation.
# ----------------------------------------------------------------------------
def _ref_single_frame(params, x, h):
    w_ih, b_ih, w_hh, b_hh = params
    C = x.shape[1]
    xn = jnp.transpose(x, (0, 2, 3, 1))
    hn = jnp.transpose(h, (0, 2, 3, 1))

    def conv(inp, w, b):
        y = lax.conv_general_dilated(inp, w, (1, 1), 'SAME',
                                     dimension_numbers=('NHWC', 'HWIO', 'NHWC'),
                                     precision=lax.Precision.HIGHEST)
        return y + b

    rz = jax.nn.sigmoid(conv(jnp.concatenate([xn, hn], -1), w_ih, b_ih))
    r, z = rz[..., :C], rz[..., C:]
    c = jnp.tanh(conv(jnp.concatenate([xn, r * hn], -1), w_hh, b_hh))
    h_new = (1.0 - z) * hn + z * c
    return jnp.transpose(h_new, (0, 3, 1, 2))


def _ref_forward(params, xs, h, seq2seq):
    outs = []
    for t in range(xs.shape[1]):
        h = _ref_single_frame(params, xs[:, t], h)
        outs.append(h)
    o = jnp.stack(outs, axis=1) if seq2seq else outs[-1]
    return o, h


# ----------------------------------------------------------------------------
if __name__ == "__main__":
    key = jax.random.PRNGKey(0)
    B, C, H, W, T = 2, 4, 16, 16, 10
    kp, kx, kh, ks = jax.random.split(key, 4)

    params = init_convgru_params(kp, C)
    prep = preprocess_params(params, C, W)

    x = jax.random.normal(kx, (B, C, H, W), jnp.float32)
    h0 = jax.random.normal(kh, (B, C, H, W), jnp.float32)

    # single-frame path (bf16 MXU operands / bf16 output -> loosened tolerance)
    h1, h1b = conv_gru_forward(prep, x, h0, C=C)
    h1 = jax.block_until_ready(h1)
    h1_ref = _ref_single_frame(params, x, h0)
    np.testing.assert_allclose(np.asarray(h1), np.asarray(h1_ref),
                               rtol=2e-2, atol=2e-2)

    # h=None path
    hz, _ = conv_gru_forward(prep, x, None, C=C)
    jax.block_until_ready(hz)

    # time-series (seq2seq) path: T=10 -> Tb=5, 2 grid steps (tests the carried
    # hidden state across grid steps as well as time blocking)
    xs = jax.random.normal(ks, (B, T, C, H, W), jnp.float32)
    o, hT = conv_gru_forward(prep, xs, h0, C=C, seq2seq=True)
    jax.block_until_ready((o, hT))
    assert o.shape == (B, T, C, H, W) and hT.shape == (B, C, H, W)
    o_ref, hT_ref = _ref_forward(params, xs, h0, True)
    np.testing.assert_allclose(np.asarray(o), np.asarray(o_ref),
                               rtol=5e-2, atol=5e-2)
    np.testing.assert_allclose(np.asarray(hT), np.asarray(hT_ref),
                               rtol=5e-2, atol=5e-2)

    # time-series, non-seq2seq path (resident output block, single writeback)
    o2, hT2 = conv_gru_forward(prep, xs, h0, C=C, seq2seq=False)
    jax.block_until_ready((o2, hT2))
    assert o2.shape == (B, C, H, W) and hT2.shape == (B, C, H, W)
    np.testing.assert_allclose(np.asarray(hT2), np.asarray(hT_ref),
                               rtol=5e-2, atol=5e-2)

    print("KERNEL_OK")
</pallas_src>

<mosaic_0001>
module attributes {stable_mosaic.version = 11 : i64} {
  func.func @_convgru_seq_kernel(%arg0: i32, %arg1: memref<1x48x128xbf16, #tpu.memory_space<vmem>>, %arg2: memref<48x128xf32, #tpu.memory_space<vmem>>, %arg3: memref<48x128xf32, #tpu.memory_space<vmem>>, %arg4: memref<3x256x384xbf16, #tpu.memory_space<vmem>>, %arg5: memref<3x128x128xbf16, #tpu.memory_space<vmem>>, %arg6: memref<1x384xf32, #tpu.memory_space<vmem>>, %arg7: memref<1x48x128xbf16, #tpu.memory_space<vmem>>, %arg8: memref<48x128xf32, #tpu.memory_space<vmem>>) attributes {dimension_semantics = [#tpu.dimension_semantics<arbitrary>], iteration_bounds = array<i64: 1>, scalar_prefetch = 0 : i64, scratch_operands = 1 : i64, tpu.core_type = #tpu.core_type<tc>, window_params = [{transform_indices = @transform_0, window_bounds = array<i64: 1, 48, 128>}, {pipeline_mode = #tpu.pipeline_mode<synchronous>, transform_indices = @transform_1, window_bounds = array<i64: 48, 128>}, {pipeline_mode = #tpu.pipeline_mode<synchronous>, transform_indices = @transform_2, window_bounds = array<i64: 48, 128>}, {pipeline_mode = #tpu.pipeline_mode<synchronous>, transform_indices = @transform_3, window_bounds = array<i64: 3, 256, 384>}, {pipeline_mode = #tpu.pipeline_mode<synchronous>, transform_indices = @transform_4, window_bounds = array<i64: 3, 128, 128>}, {pipeline_mode = #tpu.pipeline_mode<synchronous>, transform_indices = @transform_5, window_bounds = array<i64: 1, 384>}, {pipeline_mode = #tpu.pipeline_mode<synchronous>, transform_indices = @transform_6, window_bounds = array<i64: 1, 48, 128>}]} {
    %c0_i32 = arith.constant 0 : i32
    %0 = arith.cmpi eq, %arg0, %c0_i32 : i32
    %1 = arith.extui %0 : i1 to i32
    %c0_i32_0 = arith.constant 0 : i32
    %2 = arith.cmpi ne, %1, %c0_i32_0 : i32
    scf.if %2 {
      %c0_40 = arith.constant 0 : index
      %c0_41 = arith.constant 0 : index
      %66 = vector.load %arg2[%c0_40, %c0_41] : memref<48x128xf32, #tpu.memory_space<vmem>>, vector<48x128xf32>
      %c0_42 = arith.constant 0 : index
      %c0_43 = arith.constant 0 : index
      %67 = vector.load %arg8[%c0_42, %c0_43] : memref<48x128xf32, #tpu.memory_space<vmem>>, vector<48x128xf32>
      tpu.vector_store %arg8[%c0_42, %c0_43], %66 {strides = array<i32>} : memref<48x128xf32, #tpu.memory_space<vmem>>, vector<48x128xf32>,
    } else {
    }
    %c0 = arith.constant 0 : index
    %c0_1 = arith.constant 0 : index
    %3 = vector.load %arg3[%c0, %c0_1] : memref<48x128xf32, #tpu.memory_space<vmem>>, vector<48x128xf32>
    %c0_2 = arith.constant 0 : index
    %c0_3 = arith.constant 0 : index
    %4 = vector.load %arg6[%c0_2, %c0_3] : memref<1x384xf32, #tpu.memory_space<vmem>>, vector<1x384xf32>
    %c0_4 = arith.constant 0 : index
    %c0_5 = arith.constant 0 : index
    %c0_6 = arith.constant 0 : index
    %5 = vector.load %arg4[%c0_4, %c0_5, %c0_6] : memref<3x256x384xbf16, #tpu.memory_space<vmem>>, vector<1x256x384xbf16>
    %6 = vector.shape_cast %5 : vector<1x256x384xbf16> to vector<256x384xbf16>
    %c1 = arith.constant 1 : index
    %c0_7 = arith.constant 0 : index
    %c0_8 = arith.constant 0 : index
    %7 = vector.load %arg4[%c1, %c0_7, %c0_8] : memref<3x256x384xbf16, #tpu.memory_space<vmem>>, vector<1x256x384xbf16>
    %8 = vector.shape_cast %7 : vector<1x256x384xbf16> to vector<256x384xbf16>
    %c2 = arith.constant 2 : index
    %c0_9 = arith.constant 0 : index
    %c0_10 = arith.constant 0 : index
    %9 = vector.load %arg4[%c2, %c0_9, %c0_10] : memref<3x256x384xbf16, #tpu.memory_space<vmem>>, vector<1x256x384xbf16>
    %10 = vector.shape_cast %9 : vector<1x256x384xbf16> to vector<256x384xbf16>
    %c0_11 = arith.constant 0 : index
    %c0_12 = arith.constant 0 : index
    %c0_13 = arith.constant 0 : index
    %11 = vector.load %arg5[%c0_11, %c0_12, %c0_13] : memref<3x128x128xbf16, #tpu.memory_space<vmem>>, vector<1x128x128xbf16>
    %12 = vector.shape_cast %11 : vector<1x128x128xbf16> to vector<128x128xbf16>
    %c1_14 = arith.constant 1 : index
    %c0_15 = arith.constant 0 : index
    %c0_16 = arith.constant 0 : index
    %13 = vector.load %arg5[%c1_14, %c0_15, %c0_16] : memref<3x128x128xbf16, #tpu.memory_space<vmem>>, vector<1x128x128xbf16>
    %14 = vector.shape_cast %13 : vector<1x128x128xbf16> to vector<128x128xbf16>
    %c2_17 = arith.constant 2 : index
    %c0_18 = arith.constant 0 : index
    %c0_19 = arith.constant 0 : index
    %15 = vector.load %arg5[%c2_17, %c0_18, %c0_19] : memref<3x128x128xbf16, #tpu.memory_space<vmem>>, vector<1x128x128xbf16>
    %16 = vector.shape_cast %15 : vector<1x128x128xbf16> to vector<128x128xbf16>
    %c0_20 = arith.constant 0 : index
    %c0_21 = arith.constant 0 : index
    %17 = vector.load %arg8[%c0_20, %c0_21] : memref<48x128xf32, #tpu.memory_space<vmem>>, vector<48x128xf32>
    %c0_22 = arith.constant 0 : index
    %c0_23 = arith.constant 0 : index
    %c0_24 = arith.constant 0 : index
    %18 = vector.load %arg1[%c0_22, %c0_23, %c0_24] : memref<1x48x128xbf16, #tpu.memory_space<vmem>>, vector<1x48x128xbf16>
    %19 = vector.shape_cast %18 : vector<1x48x128xbf16> to vector<48x128xbf16>
    %20 = arith.truncf %17 : vector<48x128xf32> to vector<48x128xbf16>
    %21 = tpu.concatenate %19, %20 in 1 : vector<48x128xbf16>, vector<48x128xbf16> -> vector<48x256xbf16>
    %cst = arith.constant dense<0.000000e+00> : vector<48x384xf32>
    %22 = tpu.matmul %21, %6, %cst {dimension_numbers = #tpu.dot_dimension_numbers<[1], [0], [0], [1], [0, 0, 1, 1], [], []>} : vector<48x256xbf16>, vector<256x384xbf16>, vector<48x384xf32> -> vector<48x384xf32>
    %c1_i32 = arith.constant 1 : i32
    %23 = tpu.dynamic_rotate %22 by %c1_i32 dim 0 : vector<48x384xf32>, i32 -> vector<48x384xf32>
    %cst_25 = arith.constant dense<0.000000e+00> : vector<48x384xf32>
    %24 = tpu.matmul %21, %8, %cst_25 {dimension_numbers = #tpu.dot_dimension_numbers<[1], [0], [0], [1], [0, 0, 1, 1], [], []>} : vector<48x256xbf16>, vector<256x384xbf16>, vector<48x384xf32> -> vector<48x384xf32>
    %25 = arith.addf %23, %24 : vector<48x384xf32>
    %cst_26 = arith.constant dense<0.000000e+00> : vector<48x384xf32>
    %26 = tpu.matmul %21, %10, %cst_26 {dimension_numbers = #tpu.dot_dimension_numbers<[1], [0], [0], [1], [0, 0, 1, 1], [], []>} : vector<48x256xbf16>, vector<256x384xbf16>, vector<48x384xf32> -> vector<48x384xf32>
    %c47_i32 = arith.constant 47 : i32
    %27 = tpu.dynamic_rotate %26 by %c47_i32 dim 0 : vector<48x384xf32>, i32 -> vector<48x384xf32>
    %28 = arith.addf %25, %27 : vector<48x384xf32>
    %29 = vector.broadcast %4 : vector<1x384xf32> to vector<48x384xf32>
    %30 = arith.addf %28, %29 : vector<48x384xf32>
    %31 = vector.extract_strided_slice %30 {offsets = [0, 0], sizes = [48, 128], strides = [1, 1]} : vector<48x384xf32> to vector<48x128xf32>
    %32 = arith.negf %31 : vector<48x128xf32>
    %33 = math.exp %32 : vector<48x128xf32>
    %cst_27 = arith.constant 1.000000e+00 : f32
    %34 = vector.broadcast %cst_27 : f32 to vector<48x128xf32>
    %35 = arith.addf %34, %33 : vector<48x128xf32>
    %36 = arith.divf %34, %35 : vector<48x128xf32>
    %37 = arith.mulf %36, %17 : vector<48x128xf32>
    %38 = arith.truncf %37 : vector<48x128xf32> to vector<48x128xbf16>
    %cst_28 = arith.constant dense<0.000000e+00> : vector<48x128xf32>
    %39 = tpu.matmul %38, %12, %cst_28 {dimension_numbers = #tpu.dot_dimension_numbers<[1], [0], [0], [1], [0, 0, 1, 1], [], []>} : vector<48x128xbf16>, vector<128x128xbf16>, vector<48x128xf32> -> vector<48x128xf32>
    %c1_i32_29 = arith.constant 1 : i32
    %40 = tpu.dynamic_rotate %39 by %c1_i32_29 dim 0 : vector<48x128xf32>, i32 -> vector<48x128xf32>
    %cst_30 = arith.constant dense<0.000000e+00> : vector<48x128xf32>
    %41 = tpu.matmul %38, %14, %cst_30 {dimension_numbers = #tpu.dot_dimension_numbers<[1], [0], [0], [1], [0, 0, 1, 1], [], []>} : vector<48x128xbf16>, vector<128x128xbf16>, vector<48x128xf32> -> vector<48x128xf32>
    %42 = arith.addf %40, %41 : vector<48x128xf32>
    %cst_31 = arith.constant dense<0.000000e+00> : vector<48x128xf32>
    %43 = tpu.matmul %38, %16, %cst_31 {dimension_numbers = #tpu.dot_dimension_numbers<[1], [0], [0], [1], [0, 0, 1, 1], [], []>} : vector<48x128xbf16>, vector<128x128xbf16>, vector<48x128xf32> -> vector<48x128xf32>
    %c47_i32_32 = arith.constant 47 : i32
    %44 = tpu.dynamic_rotate %43 by %c47_i32_32 dim 0 : vector<48x128xf32>, i32 -> vector<48x128xf32>
    %45 = arith.addf %42, %44 : vector<48x128xf32>
    %46 = vector.extract_strided_slice %30 {offsets = [0, 128], sizes = [48, 128], strides = [1, 1]} : vector<48x384xf32> to vector<48x128xf32>
    %47 = arith.negf %46 : vector<48x128xf32>
    %48 = math.exp %47 : vector<48x128xf32>
    %cst_33 = arith.constant 1.000000e+00 : f32
    %49 = vector.broadcast %cst_33 : f32 to vector<48x128xf32>
    %50 = arith.addf %49, %48 : vector<48x128xf32>
    %51 = arith.divf %49, %50 : vector<48x128xf32>
    %52 = vector.extract_strided_slice %30 {offsets = [0, 256], sizes = [48, 128], strides = [1, 1]} : vector<48x384xf32> to vector<48x128xf32>
    %53 = arith.addf %52, %45 : vector<48x128xf32>
    %54 = math.tanh %53 : vector<48x128xf32>
    %cst_34 = arith.constant 1.000000e+00 : f32
    %55 = vector.broadcast %cst_34 : f32 to vector<48x128xf32>
    %56 = arith.subf %55, %51 : vector<48x128xf32>
    %57 = arith.mulf %56, %17 : vector<48x128xf32>
    %58 = arith.mulf %51, %54 : vector<48x128xf32>
    %59 = arith.addf %57, %58 : vector<48x128xf32>
    %60 = arith.mulf %59, %3 : vector<48x128xf32>
    %61 = arith.truncf %60 : vector<48x128xf32> to vector<48x128xbf16>
    %c0_35 = arith.constant 0 : index
    %c0_36 = arith.constant 0 : index
    %c0_37 = arith.constant 0 : index
    %62 = vector.load %arg7[%c0_35, %c0_36, %c0_37] : memref<1x48x128xbf16, #tpu.memory_space<vmem>>, vector<1x48x128xbf16>
    %63 = vector.shape_cast %62 : vector<1x48x128xbf16> to vector<48x128xbf16>
    %64 = vector.shape_cast %61 : vector<48x128xbf16> to vector<1x48x128xbf16>
    tpu.vector_store %arg7[%c0_35, %c0_36, %c0_37], %64 {strides = array<i32>} : memref<1x48x128xbf16, #tpu.memory_space<vmem>>, vector<1x48x128xbf16>,
    %c0_38 = arith.constant 0 : index
    %c0_39 = arith.constant 0 : index
    %65 = vector.load %arg8[%c0_38, %c0_39] : memref<48x128xf32, #tpu.memory_space<vmem>>, vector<48x128xf32>
    tpu.vector_store %arg8[%c0_38, %c0_39], %60 {strides = array<i32>} : memref<48x128xf32, #tpu.memory_space<vmem>>, vector<48x128xf32>,
    return
  }
  func.func @transform_0(%arg0: i32) -> (i32, i32, i32) {
    %c0_i32 = arith.constant 0 : i32
    %c0_i32_0 = arith.constant 0 : i32
    %c0_i32_1 = arith.constant 0 : i32
    return %arg0, %c0_i32, %c0_i32_0 : i32, i32, i32
  }
  func.func @transform_1(%arg0: i32) -> (i32, i32) {
    %c0_i32 = arith.constant 0 : i32
    %c0_i32_0 = arith.constant 0 : i32
    %c0_i32_1 = arith.constant 0 : i32
    return %c0_i32, %c0_i32_0 : i32, i32
  }
  func.func @transform_2(%arg0: i32) -> (i32, i32) {
    %c0_i32 = arith.constant 0 : i32
    %c0_i32_0 = arith.constant 0 : i32
    %c0_i32_1 = arith.constant 0 : i32
    return %c0_i32, %c0_i32_0 : i32, i32
  }
  func.func @transform_3(%arg0: i32) -> (i32, i32, i32) {
    %c0_i32 = arith.constant 0 : i32
    %c0_i32_0 = arith.constant 0 : i32
    %c0_i32_1 = arith.constant 0 : i32
    %c0_i32_2 = arith.constant 0 : i32
    return %c0_i32, %c0_i32_0, %c0_i32_1 : i32, i32, i32
  }
  func.func @transform_4(%arg0: i32) -> (i32, i32, i32) {
    %c0_i32 = arith.constant 0 : i32
    %c0_i32_0 = arith.constant 0 : i32
    %c0_i32_1 = arith.constant 0 : i32
    %c0_i32_2 = arith.constant 0 : i32
    return %c0_i32, %c0_i32_0, %c0_i32_1 : i32, i32, i32
  }
  func.func @transform_5(%arg0: i32) -> (i32, i32) {
    %c0_i32 = arith.constant 0 : i32
    %c0_i32_0 = arith.constant 0 : i32
    %c0_i32_1 = arith.constant 0 : i32
    return %c0_i32, %c0_i32_0 : i32, i32
  }
  func.func @transform_6(%arg0: i32) -> (i32, i32, i32) {
    %c0_i32 = arith.constant 0 : i32
    %c0_i32_0 = arith.constant 0 : i32
    %c0_i32_1 = arith.constant 0 : i32
    %c0_i32_2 = arith.constant 0 : i32
    return %c0_i32, %c0_i32_0, %c0_i32_1 : i32, i32, i32
  }
}

</mosaic_0001>

<bundles_post_ra>
// kernel: conv_gru_forward.1
= control target key start
LH: loop header
LB: loop body
LE: loop exit
PB: predicated region body
PF: predicated region fallthrough
CT: control target
= control target key end

     0   :  { %11 = vsyncpa [#allocation4], 0  ;;  %s2904_s21 = smov [#allocation3]   ;;  %s3460_s0 = inlined_call_operand.vmem [shape: bf16[1,48,128], index: 0, kind: input, shape index: {}]   ;;  %s3461_s1 = inlined_call_operand.vmem [shape: f32[48,128], index: 1, kind: input, shape index: {}]   ;;  %s3462_s2 = inlined_call_operand.vmem [shape: f32[48,128], index: 2, kind: input, shape index: {}]   ;;  %s3463_s3 = inlined_call_operand.hbm [shape: bf16[3,256,384], index: 3, kind: input, shape index: {}]   ;;  %s3464_s4 = inlined_call_operand.vmem [shape: bf16[3,128,128], index: 4, kind: input, shape index: {}]   ;;  %s3465_s5 = inlined_call_operand.vmem [shape: f32[1,384], index: 5, kind: input, shape index: {}]   ;;  %s3466_s6 = inlined_call_operand.vmem [shape: bf16[1,48,128], index: 6, kind: output, shape index: {}]  }
   0x1   :  { %s23_s22 = sshll.u32 %s2904_s21, 4  ;;  %s2880_s25 = scalar_lea.hbm %s3463_s3, 18432  ;;  %s24_s22 = int_to_ptr.vmem [resolvable:$true] %s23_s22 }
   0x2   :  { %p2881_p0 = scmp.ne.s32.totalorder %s3463_s3, %s2880_s25  ;;  %p2884_p1 = scmp.lt.u32.totalorder %s2880_s25, %s3463_s3 }
   0x4   :  { %p2886_p2 = pnand %p2884_p1, %p2881_p0 }
   0x6   :  { %2889 = shalt.err (!%p2886_p2)
}
   0x7   :  { %s2890_s30 = scalar_lea.vmem %s24_s22, 18432  ;;  %p2895_p4 = scmp.lt.s32.totalorder %s24_s22, %s24_s22 }
   0x8   :  { %p2891_p3 = scmp.ne.s32.totalorder %s24_s22, %s2890_s30  ;;  %p2896_p5 = scmp.lt.s32.totalorder %s2890_s30, %s2890_s30 }
   0xa   :  { %p2897_p6 = por %p2896_p5, %p2895_p4 }
   0xc   :  { %p2898_p7 = pnand %p2897_p6, %p2891_p3 }
   0xe   :  { %2901 = shalt.err (!%p2898_p7)
}
   0xf   :  { %s2905_s7 = smov 192   ;;  %s2906_s8 = smov 12  }
  0x10   :  { %29 = dma.hbm_to_vmem [thread:$0]  %s3463_s3, 18432, %s24_s22, [#allocation4], %s2905_s7, %s2905_s7, %s2906_s8  }
  0x11   :  { %2902 = dma.done.wait [#allocation4], 18432  }
  0x12   :  { %2903 = vsyncadd [#allocation4], 4294948864  ;;  %v2595_v0 = vld [vmem:[#allocation3 + $0x4] ss:$12 sps:$4 sm:$0xff]   ;;  %v2597_v1 = vld [vmem:[#allocation3 + $0xc8] ss:$12 sps:$4 sm:$0xff]  }
  0x13   :  { %594 = vmatprep.subr.bf16.mxu0 %v2595_v0  ;;  %v2598_v2 = vld [vmem:[#allocation3] ss:$12 sps:$4 sm:$0xff]   ;;  %2371 = vmatprep.subr.bf16.mxu1 %v2597_v1  ;;  %v2599_v3 = vld [vmem:[#allocation3 + $0x8] ss:$12 sps:$4 sm:$0xff]   ;;  %v2603_v6 = vld [vmem:[#allocation3 + $0x18] ss:$12 sps:$4 sm:$0xff]  }
  0x14   :  { %595 = vmatpush1.bf16.msra.mxu0 %v2598_v2  ;;  %v2600_v4 = vld [vmem:[#allocation3 + $0x1c] ss:$12 sps:$4 sm:$0xff]   ;;  %2372 = vmatpush3.bf16.msra.mxu1 %v2599_v3  ;;  %v2602_v5 = vld [vmem:[#allocation3 + $0xe0] ss:$12 sps:$4 sm:$0xff]   ;;  %v2607_v9 = vld [vmem:[#allocation3 + $0xf8] ss:$12 sps:$4 sm:$0xff]  }
  0x15   :  { %596 = vmatprep.subr.bf16.mxu0 %v2600_v4  ;;  %v2604_v7 = vld [vmem:[#allocation3 + $0x20] ss:$12 sps:$4 sm:$0xff]   ;;  %2373 = vmatprep.subr.bf16.mxu1 %v2602_v5  ;;  %v2608_v10 = vld [vmem:[#allocation3 + $0x30] ss:$12 sps:$4 sm:$0xff]   ;;  %v2609_v11 = vld [vmem:[#allocation3 + $0x38] ss:$12 sps:$4 sm:$0xff]  }
  0x16   :  { %v2605_v8 = vld [vmem:[#allocation3 + $0x34] ss:$12 sps:$4 sm:$0xff]   ;;  %v2610_v12 = vld [vmem:[#allocation3 + $0x4c] ss:$12 sps:$4 sm:$0xff]   ;;  %v2612_v13 = vld [vmem:[#allocation3 + $0x110] ss:$12 sps:$4 sm:$0xff]  }
  0x17   :  { %v2613_v14 = vld [vmem:[#allocation3 + $0x48] ss:$12 sps:$4 sm:$0xff]   ;;  %v2614_v15 = vld [vmem:[#allocation3 + $0x50] ss:$12 sps:$4 sm:$0xff]   ;;  %v2618_v18 = vld [vmem:[#allocation3 + $0x60] ss:$12 sps:$4 sm:$0xff]  }
  0x18   :  { %597 = vmatpush1.bf16.msra.mxu0 %v2603_v6  ;;  %2374 = vmatpush3.bf16.msra.mxu1 %v2604_v7  ;;  %v2615_v16 = vld [vmem:[#allocation3 + $0x64] ss:$12 sps:$4 sm:$0xff]   ;;  %v2617_v17 = vld [vmem:[#allocation3 + $0x128] ss:$12 sps:$4 sm:$0xff]   ;;  %v2622_v21 = vld [vmem:[#allocation3 + $0x140] ss:$12 sps:$4 sm:$0xff]  }
  0x19   :  { %598 = vmatprep.subr.bf16.mxu0 %v2605_v8  ;;  %2375 = vmatprep.subr.bf16.mxu1 %v2607_v9  ;;  %v2619_v19 = vld [vmem:[#allocation3 + $0x68] ss:$12 sps:$4 sm:$0xff]   ;;  %v2623_v22 = vld [vmem:[#allocation3 + $0x78] ss:$12 sps:$4 sm:$0xff]   ;;  %v2624_v23 = vld [vmem:[#allocation3 + $0x80] ss:$12 sps:$4 sm:$0xff]  }
  0x1a   :  { %v2620_v20 = vld [vmem:[#allocation3 + $0x7c] ss:$12 sps:$4 sm:$0xff]   ;;  %v2625_v24 = vld [vmem:[#allocation3 + $0x94] ss:$12 sps:$4 sm:$0xff]   ;;  %v2627_v25 = vld [vmem:[#allocation3 + $0x158] ss:$12 sps:$4 sm:$0xff]  }
  0x1b   :  { %v2628_v26 = vld [vmem:[#allocation3 + $0x90] ss:$12 sps:$4 sm:$0xff]   ;;  %v2629_v27 = vld [vmem:[#allocation3 + $0x98] ss:$12 sps:$4 sm:$0xff]   ;;  %v2633_v30 = vld [vmem:[#allocation3 + $0xa8] ss:$12 sps:$4 sm:$0xff]  }
  0x1c   :  { %599 = vmatpush1.bf16.msra.mxu0 %v2608_v10  ;;  %2376 = vmatpush3.bf16.msra.mxu1 %v2609_v11  ;;  %v2630_v28 = vld [vmem:[#allocation3 + $0xac] ss:$12 sps:$4 sm:$0xff]   ;;  %v2632_v29 = vld [vmem:[#allocation3 + $0x170] ss:$12 sps:$4 sm:$0xff]   ;;  %v42_v31 = vld [vmem:[%s3461_s1] sm:$0xff]  ;;  %vm2908_vm1 = vmmov 0  }
  0x1d   :  { %600 = vmatprep.subr.bf16.mxu0 %v2610_v12  ;;  %2377 = vmatprep.subr.bf16.mxu1 %v2612_v13  ;;  %v43_v32 = vld [vmem:[%s3461_s1 + $0x8] sm:$0xff]  ;;  %v2634_v33 = vld [vmem:[#allocation3 + $0xb0] ss:$12 sps:$4 sm:$0xff]   ;;  %v2969_v38 = vld [vmem:[%s3460_s0] sm:$0xff]  }
  0x1e   :  { %v2635_v34 = vld [vmem:[#allocation3 + $0xc4] ss:$12 sps:$4 sm:$0xff]   ;;  %v2962_v35 = vpack.c.bf16 %v43_v32, %v42_v31  ;;  %v2640_v37 = vld [vmem:[#allocation3 + $0xc0] ss:$12 sps:$4 sm:$0xff]   ;;  %v2642_v40 = vld [vmem:[#allocation3 + $0xdc] ss:$12 sps:$4 sm:$0xff]  }
  0x1f   :  { %v2639_v36 = vld [vmem:[#allocation3 + $0x184] ss:$12 sps:$4 sm:$0xff]   ;;  %v2637_v39 = vld [vmem:[#allocation3 + $0x180] ss:$12 sps:$4 sm:$0xff]   ;;  %v2646_v41 = vld [vmem:[#allocation3 + $0x19c] ss:$12 sps:$4 sm:$0xff]  }
  0x20   :  { %601 = vmatpush1.bf16.msra.mxu0 %v2613_v14  ;;  %2378 = vmatpush3.bf16.msra.mxu1 %v2614_v15  ;;  %v2644_v42 = vld [vmem:[#allocation3 + $0x198] ss:$12 sps:$4 sm:$0xff]   ;;  %v2648_v44 = vld [vmem:[#allocation3 + $0xf4] ss:$12 sps:$4 sm:$0xff]   ;;  %v2653_v46 = vld [vmem:[#allocation3 + $0xf0] ss:$12 sps:$4 sm:$0xff]  }
  0x21   :  { %602 = vmatprep.subr.bf16.mxu0 %v2615_v16  ;;  %2379 = vmatprep.subr.bf16.mxu1 %v2617_v17  ;;  %v2647_v43 = vld [vmem:[#allocation3 + $0xd8] ss:$12 sps:$4 sm:$0xff]   ;;  %v2652_v45 = vld [vmem:[#allocation3 + $0x1b4] ss:$12 sps:$4 sm:$0xff]   ;;  %v2650_v47 = vld [vmem:[#allocation3 + $0x1b0] ss:$12 sps:$4 sm:$0xff]  }
  0x22   :  { %689 = vmatprep.mubr.bf16.mxu1 %v2962_v35  ;;  %626 = vmatprep.mubr.bf16.mxu0 %v2962_v35  ;;  %v2654_v48 = vld [vmem:[#allocation3 + $0x10c] ss:$12 sps:$4 sm:$0xff]   ;;  %v2656_v50 = vld [vmem:[#allocation3 + $0x1c8] ss:$12 sps:$4 sm:$0xff]   ;;  %v2660_v52 = vld [vmem:[#allocation3 + $0x124] ss:$12 sps:$4 sm:$0xff]  }
  0x23   :  { %v2658_v49 = vld [vmem:[#allocation3 + $0x1cc] ss:$12 sps:$4 sm:$0xff]   ;;  %v2659_v51 = vld [vmem:[#allocation3 + $0x108] ss:$12 sps:$4 sm:$0xff]   ;;  %v2664_v53 = vld [vmem:[#allocation3 + $0x1e4] ss:$12 sps:$4 sm:$0xff]  }
  0x24   :  { %603 = vmatpush1.bf16.msra.mxu0 %v2618_v18  ;;  %2380 = vmatpush3.bf16.msra.mxu1 %v2619_v19  ;;  %v2665_v54 = vld [vmem:[#allocation3 + $0x120] ss:$12 sps:$4 sm:$0xff]   ;;  %v2666_v56 = vld [vmem:[#allocation3 + $0x13c] ss:$12 sps:$4 sm:$0xff]   ;;  %v2668_v58 = vld [vmem:[#allocation3 + $0x1f8] ss:$12 sps:$4 sm:$0xff]  }
  0x25   :  { %604 = vmatprep.subr.bf16.mxu0 %v2620_v20  ;;  %2381 = vmatprep.subr.bf16.mxu1 %v2622_v21  ;;  %v2662_v55 = vld [vmem:[#allocation3 + $0x1e0] ss:$12 sps:$4 sm:$0xff]   ;;  %v2670_v57 = vld [vmem:[#allocation3 + $0x1fc] ss:$12 sps:$4 sm:$0xff]   ;;  %v2671_v59 = vld [vmem:[#allocation3 + $0x138] ss:$12 sps:$4 sm:$0xff]  }
  0x26   :  { %v2672_v60 = vld [vmem:[#allocation3 + $0x154] ss:$12 sps:$4 sm:$0xff]   ;;  %v2674_v62 = vld [vmem:[#allocation3 + $0x210] ss:$12 sps:$4 sm:$0xff]   ;;  %v2678_v0 = vld [vmem:[#allocation3 + $0x16c] ss:$12 sps:$4 sm:$0xff]  }
  0x27   :  { %v2676_v61 = vld [vmem:[#allocation3 + $0x214] ss:$12 sps:$4 sm:$0xff]   ;;  %v2677_v63 = vld [vmem:[#allocation3 + $0x150] ss:$12 sps:$4 sm:$0xff]   ;;  %v2682_v3 = vld [vmem:[#allocation3 + $0x22c] ss:$12 sps:$4 sm:$0xff]  }
  0x28   :  { %605 = vmatpush1.bf16.msra.mxu0 %v2623_v22  ;;  %2382 = vmatpush3.bf16.msra.mxu1 %v2624_v23  ;;  %v44_v1 = vld [vmem:[%s3461_s1 + $0x10] sm:$0xff]  ;;  %v45_v2 = vld [vmem:[%s3461_s1 + $0x18] sm:$0xff]  ;;  %v2983_v5 = vld [vmem:[%s3460_s0 + $0x8] sm:$0xff]  }
  0x29   :  { %606 = vmatprep.subr.bf16.mxu0 %v2625_v24  ;;  %2383 = vmatprep.subr.bf16.mxu1 %v2627_v25  ;;  %v2978_v4 = vpack.c.bf16 %v45_v2, %v44_v1  ;;  %v2680_v6 = vld [vmem:[#allocation3 + $0x228] ss:$12 sps:$4 sm:$0xff]   ;;  %v2686_v9 = vld [vmem:[#allocation3 + $0x244] ss:$12 sps:$4 sm:$0xff]   ;;  %v2684_v10 = vld [vmem:[#allocation3 + $0x240] ss:$12 sps:$4 sm:$0xff]  }
  0x2a   :  { %v2683_v7 = vld [vmem:[#allocation3 + $0x168] ss:$12 sps:$4 sm:$0xff]   ;;  %v2692_v12 = vld [vmem:[#allocation3 + $0x260] ss:$12 sps:$4 sm:$0xff]   ;;  %v2689_v16 = vld [vmem:[#allocation3 + $0x258] ss:$12 sps:$4 sm:$0xff]  }
  0x2b   :  { %v2687_v8 = vld [vmem:[#allocation3 + $0x248] ss:$12 sps:$4 sm:$0xff]   ;;  %v46_v13 = vld [vmem:[%s3461_s1 + $0x20] sm:$0xff]  ;;  %v2695_v22 = vld [vmem:[#allocation3 + $0x270] ss:$12 sps:$4 sm:$0xff]  }
  0x2c   :  { %607 = vmatpush1.bf16.msra.mxu0 %v2628_v26  ;;  %2384 = vmatpush3.bf16.msra.mxu1 %v2629_v27  ;;  %v2688_v11 = vld [vmem:[#allocation3 + $0x188] ss:$12 sps:$4 sm:$0xff]   ;;  %v2693_v17 = vld [vmem:[#allocation3 + $0x1a0] ss:$12 sps:$4 sm:$0xff]   ;;  %v2698_v18 = vld [vmem:[#allocation3 + $0x278] ss:$12 sps:$4 sm:$0xff]  }
  0x2d   :  { %608 = vmatprep.subr.bf16.mxu0 %v2630_v28  ;;  %2385 = vmatprep.subr.bf16.mxu1 %v2632_v29  ;;  %v47_v14 = vld [vmem:[%s3461_s1 + $0x28] sm:$0xff]  ;;  %v3000_v20 = vld [vmem:[%s3460_s0 + $0x10] sm:$0xff]   ;;  %v2699_v23 = vld [vmem:[#allocation3 + $0x1b8] ss:$12 sps:$4 sm:$0xff]  }
  0x2e   :  { %v2691_v15 = vld [vmem:[#allocation3 + $0x25c] ss:$12 sps:$4 sm:$0xff]   ;;  %v2995_v19 = vpack.c.bf16 %v47_v14, %v46_v13  ;;  %v2697_v21 = vld [vmem:[#allocation3 + $0x274] ss:$12 sps:$4 sm:$0xff]   ;;  %v2702_v25 = vld [vmem:[#allocation3 + $0x28c] ss:$12 sps:$4 sm:$0xff]  }
  0x2f   :  { %v2703_v24 = vld [vmem:[#allocation3 + $0x290] ss:$12 sps:$4 sm:$0xff]   ;;  %v2700_v27 = vld [vmem:[#allocation3 + $0x288] ss:$12 sps:$4 sm:$0xff]   ;;  %v2714_v32 = vld [vmem:[#allocation3 + $0x2c0] ss:$12 sps:$4 sm:$0xff]  }
  0x30   :  { %609 = vmatpush1.bf16.msra.mxu0 %v2633_v30  ;;  %2386 = vmatpush3.bf16.msra.mxu1 %v2634_v33  ;;  %v2704_v26 = vld [vmem:[#allocation3 + $0x1d0] ss:$12 sps:$4 sm:$0xff]   ;;  %v2709_v28 = vld [vmem:[#allocation3 + $0x2a8] ss:$12 sps:$4 sm:$0xff]   ;;  %v2706_v30 = vld [vmem:[#allocation3 + $0x2a0] ss:$12 sps:$4 sm:$0xff]  }
  0x31   :  { %610 = vmatprep.subr.bf16.mxu0 %v2635_v34  ;;  %1009 = vmatprep.subr.bf16.mxu1 %v2639_v36  ;;  %v2708_v29 = vld [vmem:[#allocation3 + $0x2a4] ss:$12 sps:$4 sm:$0xff]   ;;  %v2710_v31 = vld [vmem:[#allocation3 + $0x1e8] ss:$12 sps:$4 sm:$0xff]   ;;  %v2715_v36 = vld [vmem:[#allocation3 + $0x200] ss:$12 sps:$4 sm:$0xff]  }
  0x32   :  { %v2713_v33 = vld [vmem:[#allocation3 + $0x2bc] ss:$12 sps:$4 sm:$0xff]   ;;  %v2711_v34 = vld [vmem:[#allocation3 + $0x2b8] ss:$12 sps:$4 sm:$0xff]  }
  0x33   :  { %690 = vmatmul.mubr.bf16.vlgmr.msra.gmra.mrb[0].mxu1 %v2969_v38  ;;  %v2750_v1 = vld [vmem:[#allocation3 + $0x368] ss:$12 sps:$4 sm:$0xff]   ;;  %v2764_v13 = vld [vmem:[#allocation3 + $0x470] ss:$12 sps:$4 sm:$0xff]  }
  0x34   :  { %611 = vmatpush1.bf16.msra.mxu0 %v2640_v37  ;;  %1010 = vmatpush1.bf16.msra.mxu1 %v2637_v39  ;;  %v2719_v37 = vld [vmem:[#allocation3 + $0x2d8] ss:$12 sps:$4 sm:$0xff]   ;;  %v2718_v39 = vld [vmem:[#allocation3 + $0x2d4] ss:$12 sps:$4 sm:$0xff]   ;;  %v2753_v2 = vld [vmem:[#allocation3 + $0x37c] ss:$12 sps:$4 sm:$0xff]  }
  0x35   :  { %612 = vmatprep.subr.bf16.mxu0 %v2642_v40  ;;  %1011 = vmatprep.subr.bf16.mxu1 %v2646_v41  ;;  %v2716_v40 = vld [vmem:[#allocation3 + $0x2d0] ss:$12 sps:$4 sm:$0xff]   ;;  %v2720_v41 = vld [vmem:[#allocation3 + $0x218] ss:$12 sps:$4 sm:$0xff]   ;;  %v2761_v14 = vld [vmem:[#allocation3 + $0x3a8] ss:$12 sps:$4 sm:$0xff]  }
  0x36   :  { %697 = vmatprep.mubr.bf16.mxu1 %v2978_v4 }
  0x38   :  { %613 = vmatpush1.bf16.msra.mxu0 %v2647_v43  ;;  %1012 = vmatpush1.bf16.msra.mxu1 %v2644_v42  ;;  %v2724_v42 = vld [vmem:[#allocation3 + $0x2f0] ss:$12 sps:$4 sm:$0xff]   ;;  %v2723_v43 = vld [vmem:[#allocation3 + $0x2ec] ss:$12 sps:$4 sm:$0xff]  }
  0x39   :  { %614 = vmatprep.subr.bf16.mxu0 %v2648_v44  ;;  %1013 = vmatprep.subr.bf16.mxu1 %v2652_v45  ;;  %v2721_v44 = vld [vmem:[#allocation3 + $0x2e8] ss:$12 sps:$4 sm:$0xff]   ;;  %v2725_v45 = vld [vmem:[#allocation3 + $0x230] ss:$12 sps:$4 sm:$0xff]  }
  0x3b   :  { %698 = vmatmul.mubr.bf16.gmra.mrb[4].mxu1 %v2983_v5 }
  0x3c   :  { %615 = vmatpush1.bf16.msra.mxu0 %v2653_v46  ;;  %1014 = vmatpush1.bf16.msra.mxu1 %v2650_v47  ;;  %v2728_v46 = vld [vmem:[#allocation3 + $0x304] ss:$12 sps:$4 sm:$0xff]   ;;  %v2729_v47 = vld [vmem:[#allocation3 + $0x3c8] ss:$12 sps:$4 sm:$0xff]  }
  0x3d   :  { %616 = vmatprep.subr.bf16.mxu0 %v2654_v48  ;;  %1015 = vmatprep.subr.bf16.mxu1 %v2658_v49  ;;  %v2726_v48 = vld [vmem:[#allocation3 + $0x300] ss:$12 sps:$4 sm:$0xff]   ;;  %v2730_v49 = vld [vmem:[#allocation3 + $0x308] ss:$12 sps:$4 sm:$0xff]  }
  0x3e   :  { %705 = vmatprep.mubr.bf16.mxu1 %v2995_v19 }
  0x40   :  { %617 = vmatpush1.bf16.msra.mxu0 %v2659_v51  ;;  %1016 = vmatpush1.bf16.msra.mxu1 %v2656_v50  ;;  %v2733_v50 = vld [vmem:[#allocation3 + $0x31c] ss:$12 sps:$4 sm:$0xff]   ;;  %v2734_v51 = vld [vmem:[#allocation3 + $0x3e0] ss:$12 sps:$4 sm:$0xff]  }
  0x41   :  { %618 = vmatprep.subr.bf16.mxu0 %v2660_v52  ;;  %1017 = vmatprep.subr.bf16.mxu1 %v2664_v53  ;;  %v2731_v52 = vld [vmem:[#allocation3 + $0x318] ss:$12 sps:$4 sm:$0xff]   ;;  %v2735_v53 = vld [vmem:[#allocation3 + $0x320] ss:$12 sps:$4 sm:$0xff]  }
  0x43   :  { %706 = vmatmul.mubr.bf16.gmra.mrb[8].mxu1 %v3000_v20 }
  0x44   :  { %619 = vmatpush1.bf16.msra.mxu0 %v2665_v54  ;;  %1018 = vmatpush1.bf16.msra.mxu1 %v2662_v55  ;;  %v2738_v54 = vld [vmem:[#allocation3 + $0x334] ss:$12 sps:$4 sm:$0xff]   ;;  %v2739_v55 = vld [vmem:[#allocation3 + $0x3f8] ss:$12 sps:$4 sm:$0xff]  }
  0x45   :  { %620 = vmatprep.subr.bf16.mxu0 %v2666_v56  ;;  %1019 = vmatprep.subr.bf16.mxu1 %v2670_v57  ;;  %v2736_v56 = vld [vmem:[#allocation3 + $0x330] ss:$12 sps:$4 sm:$0xff]   ;;  %v2740_v57 = vld [vmem:[#allocation3 + $0x338] ss:$12 sps:$4 sm:$0xff]  }
  0x46   :  { %1041 = vmatprep.mubr.bf16.mxu1 %v2962_v35 }
  0x48   :  { %621 = vmatpush1.bf16.msra.mxu0 %v2671_v59  ;;  %1020 = vmatpush1.bf16.msra.mxu1 %v2668_v58  ;;  %v2743_v58 = vld [vmem:[#allocation3 + $0x34c] ss:$12 sps:$4 sm:$0xff]   ;;  %v2744_v59 = vld [vmem:[#allocation3 + $0x410] ss:$12 sps:$4 sm:$0xff]  }
  0x49   :  { %622 = vmatprep.subr.bf16.mxu0 %v2672_v60  ;;  %1021 = vmatprep.subr.bf16.mxu1 %v2676_v61  ;;  %v2741_v60 = vld [vmem:[#allocation3 + $0x348] ss:$12 sps:$4 sm:$0xff]   ;;  %v2745_v61 = vld [vmem:[#allocation3 + $0x350] ss:$12 sps:$4 sm:$0xff]  }
  0x4c   :  { %623 = vmatpush1.bf16.msra.mxu0 %v2677_v63  ;;  %1022 = vmatpush1.bf16.msra.mxu1 %v2674_v62  ;;  %v2748_v62 = vld [vmem:[#allocation3 + $0x364] ss:$12 sps:$4 sm:$0xff]   ;;  %v2749_v63 = vld [vmem:[#allocation3 + $0x428] ss:$12 sps:$4 sm:$0xff]  }
  0x4d   :  { %624 = vmatprep.subr.bf16.mxu0 %v2678_v0  ;;  %1023 = vmatprep.subr.bf16.mxu1 %v2682_v3  ;;  %v2746_v0 = vld [vmem:[#allocation3 + $0x360] ss:$12 sps:$4 sm:$0xff]  }
  0x4e   :  { %v2754_v3 = vld [vmem:[#allocation3 + $0x440] ss:$12 sps:$4 sm:$0xff]  }
  0x50   :  { %625 = vmatpush1.bf16.msra.mxu0 %v2683_v7  ;;  %1024 = vmatpush1.bf16.msra.mxu1 %v2680_v6  ;;  %v2751_v6 = vld [vmem:[#allocation3 + $0x378] ss:$12 sps:$4 sm:$0xff]   ;;  %v2755_v7 = vld [vmem:[#allocation3 + $0x380] ss:$12 sps:$4 sm:$0xff]  }
  0x51   :  { %2405 = vmatprep.subr.bf16.mxu0 %v2687_v8  ;;  %1025 = vmatprep.subr.bf16.mxu1 %v2686_v9  ;;  %v2758_v8 = vld [vmem:[#allocation3 + $0x394] ss:$12 sps:$4 sm:$0xff]   ;;  %v2759_v9 = vld [vmem:[#allocation3 + $0x458] ss:$12 sps:$4 sm:$0xff]  }
  0x53   :  { %627 = vmatmul.mubr.bf16.vlgmr.msra.gmra.mrb[0].mxu0 %v2969_v38 }
  0x54   :  { %2406 = vmatpush3.bf16.msra.mxu0 %v2688_v11  ;;  %636 = vmatprep.mubr.bf16.mxu0 %v2978_v4  ;;  %v2760_v11 = vld [vmem:[#allocation3 + $0x398] ss:$12 sps:$4 sm:$0xff]  }
  0x55   :  { %1026 = vmatpush1.bf16.msra.mxu1 %v2684_v10  ;;  %2407 = vmatprep.subr.bf16.mxu0 %v2692_v12  ;;  %v2756_v10 = vld [vmem:[#allocation3 + $0x390] ss:$12 sps:$4 sm:$0xff]   ;;  %v2763_v12 = vld [vmem:[#allocation3 + $0x3ac] ss:$12 sps:$4 sm:$0xff]  }
  0x56   :  { %1027 = vmatprep.subr.bf16.mxu1 %v2691_v15  ;;  %v2765_v15 = vld [vmem:[#allocation3 + $0x3b0] ss:$12 sps:$4 sm:$0xff]  }
  0x58   :  { %2408 = vmatpush3.bf16.msra.mxu0 %v2693_v17  ;;  %v2766_v17 = vld [vmem:[#allocation3 + $0x3c0] ss:$12 sps:$4 sm:$0xff]  }
  0x59   :  { %1028 = vmatpush1.bf16.msra.mxu1 %v2689_v16  ;;  %2409 = vmatprep.subr.bf16.mxu0 %v2698_v18  ;;  %v2768_v16 = vld [vmem:[#allocation3 + $0x3c4] ss:$12 sps:$4 sm:$0xff]   ;;  %v2771_v18 = vld [vmem:[#allocation3 + $0x3dc] ss:$12 sps:$4 sm:$0xff]  }
  0x5a   :  { %1029 = vmatprep.subr.bf16.mxu1 %v2697_v21  ;;  %v2769_v21 = vld [vmem:[#allocation3 + $0x3d8] ss:$12 sps:$4 sm:$0xff]  }
  0x5b   :  { %637 = vmatmul.mubr.bf16.gmra.mrb[4].mxu0 %v2983_v5 }
  0x5c   :  { %2410 = vmatpush3.bf16.msra.mxu0 %v2699_v23  ;;  %646 = vmatprep.mubr.bf16.mxu0 %v2995_v19  ;;  %v2777_v23 = vld [vmem:[#allocation3 + $0x40c] ss:$12 sps:$4 sm:$0xff]  }
  0x5d   :  { %1030 = vmatpush1.bf16.msra.mxu1 %v2695_v22  ;;  %2411 = vmatprep.subr.bf16.mxu0 %v2703_v24  ;;  %v2772_v22 = vld [vmem:[#allocation3 + $0x3f0] ss:$12 sps:$4 sm:$0xff]   ;;  %v2775_v24 = vld [vmem:[#allocation3 + $0x408] ss:$12 sps:$4 sm:$0xff]  }
  0x5e   :  { %1031 = vmatprep.subr.bf16.mxu1 %v2702_v25  ;;  %v2780_v25 = vld [vmem:[#allocation3 + $0x424] ss:$12 sps:$4 sm:$0xff]  }
  0x60   :  { %2412 = vmatpush3.bf16.msra.mxu0 %v2704_v26  ;;  %v2778_v26 = vld [vmem:[#allocation3 + $0x420] ss:$12 sps:$4 sm:$0xff]  }
  0x61   :  { %1032 = vmatpush1.bf16.msra.mxu1 %v2700_v27  ;;  %2413 = vmatprep.subr.bf16.mxu0 %v2709_v28  ;;  %v2783_v27 = vld [vmem:[#allocation3 + $0x43c] ss:$12 sps:$4 sm:$0xff]   ;;  %v2781_v28 = vld [vmem:[#allocation3 + $0x438] ss:$12 sps:$4 sm:$0xff]  }
  0x62   :  { %1033 = vmatprep.subr.bf16.mxu1 %v2708_v29  ;;  %v2786_v29 = vld [vmem:[#allocation3 + $0x454] ss:$12 sps:$4 sm:$0xff]  }
  0x63   :  { %647 = vmatmul.mubr.bf16.gmra.mrb[8].mxu0 %v3000_v20 }
  0x64   :  { %2414 = vmatpush3.bf16.msra.mxu0 %v2710_v31  ;;  %1104 = vmatprep.mubr.bf16.mxu0 %v2962_v35  ;;  %v2789_v31 = vld [vmem:[#allocation3 + $0x46c] ss:$12 sps:$4 sm:$0xff]  }
  0x65   :  { %1034 = vmatpush1.bf16.msra.mxu1 %v2706_v30  ;;  %2415 = vmatprep.subr.bf16.mxu0 %v2714_v32  ;;  %v2784_v30 = vld [vmem:[#allocation3 + $0x450] ss:$12 sps:$4 sm:$0xff]   ;;  %v2787_v32 = vld [vmem:[#allocation3 + $0x468] ss:$12 sps:$4 sm:$0xff]  }
  0x66   :  { %1035 = vmatprep.subr.bf16.mxu1 %v2713_v33  ;;  %v732_v33 = vlaneseq }
  0x68   :  { %2416 = vmatpush3.bf16.msra.mxu0 %v2715_v36 }
  0x69   :  { %1036 = vmatpush1.bf16.msra.mxu1 %v2711_v34  ;;  %2417 = vmatprep.subr.bf16.mxu0 %v2719_v37 }
  0x6a   :  { %1037 = vmatprep.subr.bf16.mxu1 %v2718_v39 }
  0x6c   :  { %2418 = vmatpush3.bf16.msra.mxu0 %v2720_v41  ;;  %v3033_v41 = vshrl.u32 %v732_v33, 7 }
  0x6d   :  { %1038 = vmatpush1.bf16.msra.mxu1 %v2716_v40  ;;  %2419 = vmatprep.subr.bf16.mxu0 %v2724_v42 }
  0x6e   :  { %1039 = vmatprep.subr.bf16.mxu1 %v2723_v43  ;;  %vm734_vm0 = vcmp.lt.s32.totalorder %v3033_v41, 1  ;;  %vm1541_vm2 = vcmp.lt.s32.totalorder %v3033_v41, 7 }
  0x70   :  { %2420 = vmatpush3.bf16.msra.mxu0 %v2725_v45  ;;  %v2793_v45 = vld [vmem:[%s3464_s4 + $0x48] sm:$0xff]  }
  0x71   :  { %1040 = vmatpush1.bf16.msra.mxu1 %v2721_v44  ;;  %1403 = vmatprep.subr.bf16.mxu0 %v2728_v46  ;;  %v2792_v44 = vld [vmem:[%s3464_s4 + $0x8] sm:$0xff]  }
  0x72   :  { %2439 = vmatprep.subr.bf16.mxu1 %v2729_v47 }
  0x73   :  { %1105 = vmatmul.mubr.bf16.vlgmr.msra.gmra.mrb[12].mxu0 %v2969_v38 }
  0x74   :  { %1042 = vmatmul.mubr.bf16.vlgmr.msra.gmra.mrb[12].mxu1 %v2969_v38  ;;  %1404 = vmatpush1.bf16.msra.mxu0 %v2726_v48 }
  0x75   :  { %2440 = vmatpush3.bf16.msra.mxu1 %v2730_v49  ;;  %1405 = vmatprep.subr.bf16.mxu0 %v2733_v50  ;;  %v2794_v50 = vld [vmem:[%s3464_s4 + $0x10] sm:$0xff]  }
  0x76   :  { %2441 = vmatprep.subr.bf16.mxu1 %v2734_v51  ;;  %1051 = vmatprep.mubr.bf16.mxu1 %v2978_v4 }
  0x77   :  { %1112 = vmatprep.mubr.bf16.mxu0 %v2978_v4 }
  0x78   :  { %1406 = vmatpush1.bf16.msra.mxu0 %v2731_v52  ;;  %v2795_v52 = vld [vmem:[%s3464_s4 + $0x50] sm:$0xff]  }
  0x79   :  { %2442 = vmatpush3.bf16.msra.mxu1 %v2735_v53  ;;  %1407 = vmatprep.subr.bf16.mxu0 %v2738_v54 }
  0x7a   :  { %2443 = vmatprep.subr.bf16.mxu1 %v2739_v55 }
  0x7b   :  { %1113 = vmatmul.mubr.bf16.gmra.mrb[16].mxu0 %v2983_v5 }
  0x7c   :  { %1052 = vmatmul.mubr.bf16.gmra.mrb[16].mxu1 %v2983_v5  ;;  %1408 = vmatpush1.bf16.msra.mxu0 %v2736_v56 }
  0x7d   :  { %2444 = vmatpush3.bf16.msra.mxu1 %v2740_v57  ;;  %1409 = vmatprep.subr.bf16.mxu0 %v2743_v58  ;;  %v2796_v57 = vld [vmem:[%s3464_s4 + $0x18] sm:$0xff]  }
  0x7e   :  { %2445 = vmatprep.subr.bf16.mxu1 %v2744_v59  ;;  %1061 = vmatprep.mubr.bf16.mxu1 %v2995_v19  ;;  %v2797_v59 = vld [vmem:[%s3464_s4 + $0x58] sm:$0xff]  }
  0x7f   :  { %1120 = vmatprep.mubr.bf16.mxu0 %v2995_v19 }
  0x80   :  { %1410 = vmatpush1.bf16.msra.mxu0 %v2741_v60 }
  0x81   :  { %2446 = vmatpush3.bf16.msra.mxu1 %v2745_v61  ;;  %1411 = vmatprep.subr.bf16.mxu0 %v2748_v62 }
  0x82   :  { %2447 = vmatprep.subr.bf16.mxu1 %v2749_v63 }
  0x83   :  { %1121 = vmatmul.mubr.bf16.gmra.mrb[20].mxu0 %v3000_v20 }
  0x84   :  { %1062 = vmatmul.mubr.bf16.gmra.mrb[20].mxu1 %v3000_v20  ;;  %1412 = vmatpush1.bf16.msra.mxu0 %v2746_v0 }
  0x85   :  { %2448 = vmatpush3.bf16.msra.mxu1 %v2750_v1  ;;  %1413 = vmatprep.subr.bf16.mxu0 %v2753_v2  ;;  %v2798_v2 = vld [vmem:[%s3464_s4 + $0x20] sm:$0xff]  }
  0x86   :  { %2449 = vmatprep.subr.bf16.mxu1 %v2754_v3  ;;  %1498 = vmatprep.mubr.bf16.mxu1 %v2962_v35 }
  0x87   :  { %1435 = vmatprep.mubr.bf16.mxu0 %v2962_v35  ;;  %v2774_v35 = vld [vmem:[#allocation3 + $0x3f4] ss:$12 sps:$4 sm:$0xff]  }
  0x88   :  { %1414 = vmatpush1.bf16.msra.mxu0 %v2751_v6 }
  0x89   :  { %2450 = vmatpush3.bf16.msra.mxu1 %v2755_v7  ;;  %1415 = vmatprep.subr.bf16.mxu0 %v2758_v8  ;;  %v2799_v8 = vld [vmem:[%s3464_s4 + $0x60] sm:$0xff]  }
  0x8a   :  { %2451 = vmatprep.subr.bf16.mxu1 %v2759_v9 }
  0x8c   :  { %1416 = vmatpush1.bf16.msra.mxu0 %v2756_v10 }
  0x8d   :  { %2452 = vmatpush3.bf16.msra.mxu1 %v2760_v11  ;;  %1417 = vmatprep.subr.bf16.mxu0 %v2763_v12 }
  0x8e   :  { %2453 = vmatprep.subr.bf16.mxu1 %v2764_v13 }
  0x90   :  { %1418 = vmatpush1.bf16.msra.mxu0 %v2761_v14 }
  0x91   :  { %2454 = vmatpush3.bf16.msra.mxu1 %v2765_v15  ;;  %1419 = vmatprep.subr.bf16.mxu0 %v2768_v16  ;;  %v2800_v15 = vld [vmem:[%s3464_s4 + $0x28] sm:$0xff]  }
  0x94   :  { %1499 = vmatmul.mubr.bf16.vlgmr.msra.gmra.mrb[24].mxu1 %v2969_v38  ;;  %1420 = vmatpush1.bf16.msra.mxu0 %v2766_v17 }
  0x95   :  { %1421 = vmatprep.subr.bf16.mxu0 %v2771_v18  ;;  %1506 = vmatprep.mubr.bf16.mxu1 %v2978_v4 }
  0x98   :  { %1422 = vmatpush1.bf16.msra.mxu0 %v2769_v21  ;;  %v2801_v21 = vld [vmem:[%s3464_s4 + $0x68] sm:$0xff]  }
  0x99   :  { %1423 = vmatprep.subr.bf16.mxu0 %v2774_v35 }
  0x9c   :  { %1507 = vmatmul.mubr.bf16.gmra.mrb[28].mxu1 %v2983_v5  ;;  %1424 = vmatpush1.bf16.msra.mxu0 %v2772_v22 }
  0x9d   :  { %1425 = vmatprep.subr.bf16.mxu0 %v2777_v23  ;;  %1514 = vmatprep.mubr.bf16.mxu1 %v2995_v19 }
  0xa0   :  { %1426 = vmatpush1.bf16.msra.mxu0 %v2775_v24 }
  0xa1   :  { %1427 = vmatprep.subr.bf16.mxu0 %v2780_v25 }
  0xa4   :  { %1515 = vmatmul.mubr.bf16.gmra.mrb[32].mxu1 %v3000_v20  ;;  %1428 = vmatpush1.bf16.msra.mxu0 %v2778_v26 }
  0xa5   :  { %1429 = vmatprep.subr.bf16.mxu0 %v2783_v27 }
  0xa8   :  { %1430 = vmatpush1.bf16.msra.mxu0 %v2781_v28 }
  0xa9   :  { %1431 = vmatprep.subr.bf16.mxu0 %v2786_v29 }
  0xac   :  { %1432 = vmatpush1.bf16.msra.mxu0 %v2784_v30  ;;  %v2802_v30 = vld [vmem:[%s3464_s4 + $0x30] sm:$0xff]  }
  0xad   :  { %1433 = vmatprep.subr.bf16.mxu0 %v2789_v31 }
  0xb0   :  { %1434 = vmatpush1.bf16.msra.mxu0 %v2787_v32 }
  0xb3   :  { %1436 = vmatmul.mubr.bf16.vlgmr.msra.gmra.mrb[24].mxu0 %v2969_v38 }
  0xb4   :  { %1445 = vmatprep.mubr.bf16.mxu0 %v2978_v4 }
  0xbb   :  { %1446 = vmatmul.mubr.bf16.gmra.mrb[28].mxu0 %v2983_v5  ;;  %v2790_v5 = vld [vmem:[%s3464_s4] sm:$0xff]  }
  0xbc   :  { %1455 = vmatprep.mubr.bf16.mxu0 %v2995_v19  ;;  %v2907_v19 = vmov 0.0  }
  0xbd   :  { %2506 = vmatprep.subr.bf16.mxu1 %v2907_v19  ;;  %2534 = vmatprep.subr.bf16.mxu0 %v2907_v19 }
  0xbe   :  { %2507 = vmatpush3.bf16.msra.mxu1 %v2790_v5  ;;  %2522 = vmatprep.mubr.msk.bf16.mxu1 %vm2908_vm1, %v2907_v19 }
  0xbf   :  { %2508 = vmatprep.subr.bf16.mxu1 %v2907_v19 }
  0xc2   :  { %2509 = vmatpush3.bf16.msra.mxu1 %v2792_v44 }
  0xc3   :  { %1456 = vmatmul.mubr.bf16.gmra.mrb[32].mxu0 %v3000_v20  ;;  %v2791_v20 = vld [vmem:[%s3464_s4 + $0x40] sm:$0xff]   ;;  %2510 = vmatprep.subr.bf16.mxu1 %v2907_v19 }
  0xc4   :  { %2535 = vmatpush3.bf16.msra.mxu0 %v2791_v20  ;;  %2550 = vmatprep.mubr.msk.bf16.mxu0 %vm2908_vm1, %v2907_v19 }
  0xc5   :  { %2536 = vmatprep.subr.bf16.mxu0 %v2907_v19 }
  0xc6   :  { %2511 = vmatpush3.bf16.msra.mxu1 %v2794_v50 }
  0xc7   :  { %2512 = vmatprep.subr.bf16.mxu1 %v2907_v19 }
  0xc8   :  { %2537 = vmatpush3.bf16.msra.mxu0 %v2793_v45 }
  0xc9   :  { %2538 = vmatprep.subr.bf16.mxu0 %v2907_v19 }
  0xca   :  { %2513 = vmatpush3.bf16.msra.mxu1 %v2796_v57 }
  0xcb   :  { %2514 = vmatprep.subr.bf16.mxu1 %v2907_v19 }
  0xcc   :  { %2539 = vmatpush3.bf16.msra.mxu0 %v2795_v52 }
  0xcd   :  { %2540 = vmatprep.subr.bf16.mxu0 %v2907_v19 }
  0xce   :  { %2515 = vmatpush3.bf16.msra.mxu1 %v2798_v2 }
  0xcf   :  { %2516 = vmatprep.subr.bf16.mxu1 %v2907_v19 }
  0xd0   :  { %2541 = vmatpush3.bf16.msra.mxu0 %v2797_v59 }
  0xd1   :  { %2542 = vmatprep.subr.bf16.mxu0 %v2907_v19 }
  0xd2   :  { %2517 = vmatpush3.bf16.msra.mxu1 %v2800_v15 }
  0xd3   :  { %2518 = vmatprep.subr.bf16.mxu1 %v2907_v19 }
  0xd4   :  { %2543 = vmatpush3.bf16.msra.mxu0 %v2799_v8 }
  0xd5   :  { %2544 = vmatprep.subr.bf16.mxu0 %v2907_v19 }
  0xd6   :  { %2519 = vmatpush3.bf16.msra.mxu1 %v2802_v30 }
  0xd7   :  { %2520 = vmatprep.subr.bf16.mxu1 %v2907_v19 }
  0xd8   :  { %2545 = vmatpush3.bf16.msra.mxu0 %v2801_v21 }
  0xd9   :  { %2546 = vmatprep.subr.bf16.mxu0 %v2907_v19 }
 0x106   :  { %v2387_v34 = vpop.f32.mrb[0].mxu1 }
 0x107   :  { %v2388_v36 = vpop.f32.mrb[1].mxu1 }
 0x108   :  { %v3031_v37 = vadd.f32 %v2388_v36, %v2387_v34  ;;  %v2390_v39 = vpop.f32.mrb[2].mxu1  ;;  %v2803_v36 = vld [vmem:[%s3464_s4 + $0x70] sm:$0xff]  }
 0x109   :  { %v2391_v40 = vpop.f32.mrb[3].mxu1  ;;  %2547 = vmatpush3.bf16.msra.mxu0 %v2803_v36 }
 0x10a   :  { %v2392_v42 = vadd.f32 %v2391_v40, %v2390_v39  ;;  %v716_v38 = vrot.slane %v3031_v37, 7  ;;  %v2804_v40 = vld [vmem:[%s3464_s4 + $0x38] sm:$0xff]   ;;  %2548 = vmatprep.subr.bf16.mxu0 %v2907_v19 }
 0x10b   :  { %2521 = vmatpush3.bf16.msra.mxu1 %v2804_v40 }
 0x10c   :  { %v719_v43 = vrot.slane %v2392_v42, 7  ;;  %2562 = vmatprep.subr.bf16.mxu1 %v2907_v19 }
 0x10e   :  { %v3041_v4 = vsel %vm734_vm0, %v716_v38, %v719_v43  ;;  %v2393_v46 = vpop.f32.mrb[4].mxu1 }
 0x10f   :  { %v2394_v47 = vpop.f32.mrb[5].mxu1 }
 0x110   :  { %v2395_v48 = vadd.f32 %v2394_v47, %v2393_v46  ;;  %v2396_v49 = vpop.f32.mrb[6].mxu1 }
 0x111   :  { %v2397_v51 = vpop.f32.mrb[7].mxu1 }
 0x112   :  { %v722_v53 = vrot.slane %v2395_v48, 7  ;;  %v2398_v54 = vadd.f32 %v2397_v51, %v2396_v49 }
 0x114   :  { %v725_v55 = vrot.slane %v2398_v54, 7  ;;  %v3070_v56 = vsel %vm734_vm0, %v719_v43, %v722_v53 }
 0x116   :  { %v3086_v62 = vsel %vm734_vm0, %v722_v53, %v725_v55  ;;  %v2399_v7 = vpop.f32.mrb[8].mxu1 }
 0x117   :  { %v2400_v9 = vpop.f32.mrb[9].mxu1 }
 0x118   :  { %v2401_v11 = vadd.f32 %v2400_v9, %v2399_v7  ;;  %v2402_v12 = vpop.f32.mrb[10].mxu1 }
 0x119   :  { %v2403_v14 = vpop.f32.mrb[11].mxu1 }
 0x11a   :  { %v728_v17 = vrot.slane %v2401_v11, 7  ;;  %v2404_v18 = vadd.f32 %v2403_v14, %v2402_v12 }
 0x11c   :  { %v731_v25 = vrot.slane %v2404_v18, 7  ;;  %v3119_v26 = vsel %vm734_vm0, %v725_v55, %v728_v17 }
 0x11e   :  { %v752_v32 = vsel %vm734_vm0, %v731_v25, %v716_v38  ;;  %v3136_v34 = vsel %vm734_vm0, %v728_v17, %v731_v25  ;;  %v2805_v38 = vld [vmem:[%s3464_s4 + $0x78] sm:$0xff]  }
 0x11f   :  { %2549 = vmatpush3.bf16.msra.mxu0 %v2805_v38 }
 0x126   :  { %v3076_v58 = vpop.f32.mrb[0].mxu0 }
 0x127   :  { %v714_v60 = vrot.slane %v3076_v58, 7  ;;  %v3082_v61 = vpop.f32.mrb[1].mxu0 }
 0x128   :  { %v632_v63 = vpop.f32.mrb[2].mxu0  ;;  %v715_v3 = vrot.slane %v3082_v61, 7 }
 0x129   :  { %v717_v0 = vrot.slane %v632_v63, 7  ;;  %v634_v1 = vpop.f32.mrb[3].mxu0 }
 0x12a   :  { %v718_v6 = vrot.slane %v634_v1, 7 }
 0x12b   :  { %v3101_v10 = vsel %vm734_vm0, %v714_v60, %v717_v0 }
 0x12c   :  { %v3107_v13 = vsel %vm734_vm0, %v715_v3, %v718_v6 }
 0x12e   :  { %v638_v16 = vpop.f32.mrb[4].mxu0 }
 0x12f   :  { %v720_v35 = vrot.slane %v638_v16, 7  ;;  %v640_v22 = vpop.f32.mrb[5].mxu0 }
 0x130   :  { %v721_v23 = vrot.slane %v640_v22, 7  ;;  %v642_v24 = vpop.f32.mrb[6].mxu0 }
 0x131   :  { %v723_v27 = vrot.slane %v642_v24, 7  ;;  %v644_v28 = vpop.f32.mrb[7].mxu0  ;;  %v744_v29 = vsel %vm734_vm0, %v717_v0, %v720_v35 }
 0x132   :  { %v724_v31 = vrot.slane %v644_v28, 7  ;;  %v745_v33 = vsel %vm734_vm0, %v718_v6, %v721_v23 }
 0x133   :  { %v741_v39 = vsel %vm734_vm0, %v720_v35, %v723_v27 }
 0x134   :  { %v742_v37 = vsel %vm734_vm0, %v721_v23, %v724_v31 }
 0x136   :  { %v648_v42 = vpop.f32.mrb[8].mxu0 }
 0x137   :  { %v726_v43 = vrot.slane %v648_v42, 7  ;;  %v650_v5 = vpop.f32.mrb[9].mxu0 }
 0x138   :  { %v727_v20 = vrot.slane %v650_v5, 7  ;;  %v652_v44 = vpop.f32.mrb[10].mxu0 }
 0x139   :  { %v729_v45 = vrot.slane %v652_v44, 7  ;;  %v654_v46 = vpop.f32.mrb[11].mxu0  ;;  %v738_v47 = vsel %vm734_vm0, %v723_v27, %v726_v43 }
 0x13a   :  { %v730_v48 = vrot.slane %v654_v46, 7  ;;  %v739_v49 = vsel %vm734_vm0, %v724_v31, %v727_v20 }
 0x13b   :  { %v750_v50 = vsel %vm734_vm0, %v729_v45, %v714_v60  ;;  %v735_v51 = vsel %vm734_vm0, %v726_v43, %v729_v45 }
 0x13c   :  { %v751_v52 = vsel %vm734_vm0, %v730_v48, %v715_v3  ;;  %v736_v53 = vsel %vm734_vm0, %v727_v20, %v730_v48 }
 0x146   :  { %v2421_v54 = vpop.f32.mrb[12].mxu0 }
 0x147   :  { %v1043_v55 = vpop.f32.mrb[12].mxu1  ;;  %v2422_v57 = vpop.f32.mrb[13].mxu0 }
 0x148   :  { %v3174_v59 = vadd.f32 %v1043_v55, %v750_v50  ;;  %v1045_v58 = vpop.f32.mrb[13].mxu1  ;;  %v2423_v63 = vadd.f32 %v2422_v57, %v2421_v54  ;;  %v2424_v0 = vpop.f32.mrb[14].mxu0 }
 0x149   :  { %v3176_v60 = vadd.f32 %v1045_v58, %v751_v52  ;;  %v1047_v1 = vpop.f32.mrb[14].mxu1  ;;  %v2425_v2 = vpop.f32.mrb[15].mxu0 }
 0x14a   :  { %v1131_v6 = vadd.f32 %v2423_v63, %v752_v32  ;;  %v3179_v61 = vadd.f32 %v1047_v1, %v3101_v10  ;;  %v1049_v3 = vpop.f32.mrb[15].mxu1  ;;  %v2426_v7 = vadd.f32 %v2425_v2, %v2424_v0 }
 0x14b   :  { %v3182_v8 = vadd.f32 %v1049_v3, %v3107_v13 }
 0x14c   :  { %v1134_v9 = vadd.f32 %v2426_v7, %v3041_v4 }
 0x14e   :  { %v2427_v11 = vpop.f32.mrb[16].mxu0 }
 0x14f   :  { %v1053_v12 = vpop.f32.mrb[16].mxu1  ;;  %v2428_v14 = vpop.f32.mrb[17].mxu0 }
 0x150   :  { %v3185_v15 = vadd.f32 %v1053_v12, %v744_v29  ;;  %v1055_v16 = vpop.f32.mrb[17].mxu1  ;;  %v2429_v17 = vadd.f32 %v2428_v14, %v2427_v11  ;;  %v2430_v18 = vpop.f32.mrb[18].mxu0 }
 0x151   :  { %v3187_v21 = vadd.f32 %v1055_v16, %v745_v33  ;;  %v1057_v35 = vpop.f32.mrb[18].mxu1  ;;  %v2431_v10 = vpop.f32.mrb[19].mxu0 }
 0x152   :  { %v3189_v22 = vadd.f32 %v1057_v35, %v741_v39  ;;  %v1059_v23 = vpop.f32.mrb[19].mxu1  ;;  %v1137_v13 = vadd.f32 %v2429_v17, %v3070_v56  ;;  %v2432_v24 = vadd.f32 %v2431_v10, %v2430_v18 }
 0x153   :  { %v3192_v25 = vadd.f32 %v1059_v23, %v742_v37 }
 0x154   :  { %v1140_v4 = vadd.f32 %v2432_v24, %v3086_v62 }
 0x156   :  { %v2433_v27 = vpop.f32.mrb[20].mxu0 }
 0x157   :  { %v1063_v28 = vpop.f32.mrb[20].mxu1  ;;  %v2434_v29 = vpop.f32.mrb[21].mxu0 }
 0x158   :  { %v3195_v30 = vadd.f32 %v1063_v28, %v738_v47  ;;  %v1065_v31 = vpop.f32.mrb[21].mxu1  ;;  %v2435_v32 = vadd.f32 %v2434_v29, %v2433_v27  ;;  %v2436_v33 = vpop.f32.mrb[22].mxu0  ;;  %v1589_v47 = vsub.s32 2, %v3033_v41 }
 0x159   :  { %v3197_v36 = vadd.f32 %v1065_v31, %v739_v49  ;;  %v1067_v39 = vpop.f32.mrb[22].mxu1  ;;  %v2437_v40 = vpop.f32.mrb[23].mxu0  ;;  %v60_v49 = vld [vmem:[%s3465_s5] sm:$0x7] }
 0x15a   :  { %v3199_v42 = vadd.f32 %v1067_v39, %v735_v51  ;;  %v1069_v56 = vpop.f32.mrb[23].mxu1  ;;  %v1143_v37 = vadd.f32 %v2435_v32, %v3119_v26  ;;  %v2438_v38 = vadd.f32 %v2437_v40, %v2436_v33  ;;  %v1590_v51 = vrot.slane %v60_v49, %v1589_v47 }
 0x15b   :  { %v3202_v43 = vadd.f32 %v1069_v56, %v736_v53 }
 0x15c   :  { %v1146_v62 = vadd.f32 %v2438_v38, %v3136_v34  ;;  %v1581_v38 = vsub.s32 0, %v3033_v41 }
 0x167   :  { %v2455_v5 = vpop.f32.mrb[24].mxu1 }
 0x168   :  { %v2456_v20 = vpop.f32.mrb[25].mxu1 }
 0x169   :  { %v2457_v44 = vadd.f32 %v2456_v20, %v2455_v5  ;;  %v2458_v45 = vpop.f32.mrb[26].mxu1 }
 0x16a   :  { %v2459_v46 = vpop.f32.mrb[27].mxu1 }
 0x16b   :  { %v1525_v48 = vrot.slane %v2457_v44, 1  ;;  %v2460_v50 = vadd.f32 %v2459_v46, %v2458_v45 }
 0x16d   :  { %v1528_v26 = vrot.slane %v2460_v50, 1 }
 0x16f   :  { %v1556_v34 = vsel %vm1541_vm2, %v1525_v48, %v1528_v26  ;;  %v2461_v52 = vpop.f32.mrb[28].mxu1 }
 0x170   :  { %v1562_v53 = vadd.f32 %v1556_v34, %v1131_v6  ;;  %v2462_v54 = vpop.f32.mrb[29].mxu1 }
 0x171   :  { %v2463_v55 = vadd.f32 %v2462_v54, %v2461_v52  ;;  %v2464_v57 = vpop.f32.mrb[30].mxu1 }
 0x172   :  { %v3212_v58 = vadd.f32 %v1590_v51, %v1562_v53  ;;  %v2465_v63 = vpop.f32.mrb[31].mxu1 }
 0x173   :  { %v1531_v0 = vrot.slane %v2463_v55, 1  ;;  %v2466_v1 = vadd.f32 %v2465_v63, %v2464_v57 }
 0x175   :  { %v1553_v2 = vsel %vm1541_vm2, %v1528_v26, %v1531_v0  ;;  %v1534_v3 = vrot.slane %v2466_v1, 1 }
 0x176   :  { %v1565_v7 = vadd.f32 %v1553_v2, %v1134_v9 }
 0x177   :  { %v1550_v11 = vsel %vm1541_vm2, %v1531_v0, %v1534_v3  ;;  %v2467_v12 = vpop.f32.mrb[32].mxu1 }
 0x178   :  { %v3218_v14 = vadd.f32 %v1590_v51, %v1565_v7  ;;  %v1568_v6 = vadd.f32 %v1550_v11, %v1137_v13  ;;  %v2468_v16 = vpop.f32.mrb[33].mxu1 }
 0x179   :  { %v2469_v17 = vadd.f32 %v2468_v16, %v2467_v12  ;;  %v2470_v18 = vpop.f32.mrb[34].mxu1 }
 0x17a   :  { %v3220_v35 = vadd.f32 %v1590_v51, %v1568_v6  ;;  %v2471_v10 = vpop.f32.mrb[35].mxu1 }
 0x17b   :  { %v1537_v23 = vrot.slane %v2469_v17, 1  ;;  %v2472_v24 = vadd.f32 %v2471_v10, %v2470_v18 }
 0x17d   :  { %v1547_v27 = vsel %vm1541_vm2, %v1534_v3, %v1537_v23  ;;  %v1540_v28 = vrot.slane %v2472_v24, 1 }
 0x17e   :  { %v1571_v9 = vadd.f32 %v1547_v27, %v1140_v4  ;;  %v1585_v4 = vsub.s32 1, %v3033_v41 }
 0x17f   :  { %v1544_v29 = vsel %vm1541_vm2, %v1537_v23, %v1540_v28  ;;  %v1559_v31 = vsel %vm1541_vm2, %v1540_v28, %v1525_v48  ;;  %v1582_v48 = vrot.slane %v60_v49, %v1581_v38 }
 0x180   :  { %v3228_v13 = vadd.f32 %v1590_v51, %v1571_v9  ;;  %v1574_v32 = vadd.f32 %v1544_v29, %v1143_v37  ;;  %v1577_v33 = vadd.f32 %v1559_v31, %v1146_v62  ;;  %v3241_v50 = vrot.slane %v60_v49, %v1585_v4 }
 0x182   :  { %v3230_v39 = vadd.f32 %v1590_v51, %v1574_v32  ;;  %v3232_v40 = vadd.f32 %v1590_v51, %v1577_v33 }
 0x186   :  { %v1437_v56 = vpop.f32.mrb[24].mxu0 }
 0x187   :  { %v3235_v5 = vpop.f32.mrb[25].mxu0  ;;  %v1523_v44 = vrot.slane %v1437_v56, 1 }
 0x188   :  { %v1441_v20 = vpop.f32.mrb[26].mxu0  ;;  %v1524_v47 = vrot.slane %v3235_v5, 1 }
 0x189   :  { %v1526_v45 = vrot.slane %v1441_v20, 1  ;;  %v1443_v46 = vpop.f32.mrb[27].mxu0 }
 0x18a   :  { %v1527_v37 = vrot.slane %v1443_v46, 1 }
 0x18b   :  { %v1554_v62 = vsel %vm1541_vm2, %v1523_v44, %v1526_v45 }
 0x18c   :  { %v1560_v26 = vadd.f32 %v1554_v62, %v3174_v59  ;;  %v1555_v51 = vsel %vm1541_vm2, %v1524_v47, %v1527_v37 }
 0x18d   :  { %v1561_v34 = vadd.f32 %v1555_v51, %v3176_v60 }
 0x18e   :  { %v1594_v52 = vadd.f32 %v1582_v48, %v1560_v26  ;;  %v1447_v53 = vpop.f32.mrb[28].mxu0 }
 0x18f   :  { %v3248_v54 = vadd.f32 %v3241_v50, %v1561_v34  ;;  %v1529_v55 = vrot.slane %v1447_v53, 1  ;;  %v1449_v57 = vpop.f32.mrb[29].mxu0 }
 0x190   :  { %v2306_v63 = vmul.f32 -1.442695, %v1594_v52  ;;  %v1530_v0 = vrot.slane %v1449_v57, 1  ;;  %v1451_v1 = vpop.f32.mrb[30].mxu0 }
 0x191   :  { %v1551_v49 = vsel %vm1541_vm2, %v1526_v45, %v1529_v55  ;;  %v1532_v2 = vrot.slane %v1451_v1, 1  ;;  %v1453_v59 = vpop.f32.mrb[31].mxu0 }
 0x192   :  { %2814 = vpow2.f32 %v2306_v63  ;;  %v1563_v3 = vadd.f32 %v1551_v49, %v3179_v61  ;;  %v1552_v60 = vsel %vm1541_vm2, %v1527_v37, %v1530_v0  ;;  %v1533_v7 = vrot.slane %v1453_v59, 1 }
 0x193   :  { %v1564_v11 = vadd.f32 %v1552_v60, %v3182_v8  ;;  %v1548_v12 = vsel %vm1541_vm2, %v1529_v55, %v1532_v2 }
 0x194   :  { %v1597_v6 = vadd.f32 %v1582_v48, %v1563_v3  ;;  %v1566_v16 = vadd.f32 %v1548_v12, %v3185_v15  ;;  %v1549_v17 = vsel %vm1541_vm2, %v1530_v0, %v1533_v7  ;;  %v3304_v12 = vld [vmem:[%s3461_s1 + $0x8] sm:$0xff] }
 0x195   :  { %v3262_v18 = vadd.f32 %v3241_v50, %v1564_v11  ;;  %v1567_v61 = vadd.f32 %v1549_v17, %v3187_v21 }
 0x196   :  { %v2307_v10 = vmul.f32 -1.442695, %v1597_v6  ;;  %v1600_v23 = vadd.f32 %v1582_v48, %v1566_v16  ;;  %v1457_v24 = vpop.f32.mrb[32].mxu0  ;;  %v2806_v16 = vld [vmem:[%s3464_s4 + $0x80] sm:$0xff]  }
 0x197   :  { %v3266_v27 = vadd.f32 %v3241_v50, %v1567_v61  ;;  %v1535_v8 = vrot.slane %v1457_v24, 1  ;;  %v1459_v28 = vpop.f32.mrb[33].mxu0  ;;  %v2807_v61 = vld [vmem:[%s3464_s4 + $0x88] sm:$0xff]   ;;  %v3321_v24 = vld [vmem:[%s3461_s1 + $0x10] sm:$0xff] }
 0x198   :  { %2816 = vpow2.f32 %v2307_v10  ;;  %v2308_v9 = vmul.f32 -1.442695, %v1600_v23  ;;  %v1536_v29 = vrot.slane %v1459_v28, 1  ;;  %v1461_v15 = vpop.f32.mrb[34].mxu0  ;;  %v3327_v28 = vld [vmem:[%s3461_s1 + $0x18] sm:$0xff] }
 0x199   :  { %v1545_v31 = vsel %vm1541_vm2, %v1532_v2, %v1535_v8  ;;  %v1538_v32 = vrot.slane %v1461_v15, 1  ;;  %v1463_v33 = vpop.f32.mrb[35].mxu0  ;;  %v2808_v15 = vld [vmem:[%s3464_s4 + $0x90] sm:$0xff]  }
 0x19a   :  { %v1569_v56 = vadd.f32 %v1545_v31, %v3189_v22  ;;  %v1546_v21 = vsel %vm1541_vm2, %v1533_v7, %v1536_v29  ;;  %v1539_v38 = vrot.slane %v1463_v33, 1  ;;  %2818 = vpow2.f32 %v2308_v9  ;;  %v3337_v33 = vld [vmem:[%s3461_s1 + $0x20] sm:$0xff] }
 0x19b   :  { %v1570_v5 = vadd.f32 %v1546_v21, %v3192_v25  ;;  %v1542_v4 = vsel %vm1541_vm2, %v1535_v8, %v1538_v32  ;;  %v1557_v20 = vsel %vm1541_vm2, %v1538_v32, %v1523_v44  ;;  %v3343_v21 = vld [vmem:[%s3461_s1 + $0x28] sm:$0xff] }
 0x19c   :  { %v2815_v45 = vpop.eup %2814  ;;  %v1603_v46 = vadd.f32 %v1582_v48, %v1569_v56  ;;  %v1572_v37 = vadd.f32 %v1542_v4, %v3195_v30  ;;  %v1575_v62 = vadd.f32 %v1557_v20, %v3199_v42  ;;  %v1543_v22 = vsel %vm1541_vm2, %v1536_v29, %v1539_v38  ;;  %v2810_v20 = vld [vmem:[%s3464_s4 + $0xa0] sm:$0xff]  }
 0x19d   :  { %v3283_v26 = vadd.f32 %v3241_v50, %v1570_v5  ;;  %v1558_v25 = vsel %vm1541_vm2, %v1539_v38, %v1524_v47  ;;  %v1573_v51 = vadd.f32 %v1543_v22, %v3197_v36  ;;  %v1630_v34 = vadd.f32 1.0, %v2815_v45  ;;  %v2809_v5 = vld [vmem:[%s3464_s4 + $0x98] sm:$0xff]   ;;  %v2811_v45 = vld [vmem:[%s3464_s4 + $0xa8] sm:$0xff]  }
 0x19e   :  { %v2309_v52 = vmul.f32 -1.442695, %v1603_v46  ;;  %v1606_v44 = vadd.f32 %v1582_v48, %v1572_v37  ;;  %v1609_v53 = vadd.f32 %v1582_v48, %v1575_v62  ;;  %v1576_v55 = vadd.f32 %v1558_v25, %v3202_v43  ;;  %v2812_v46 = vld [vmem:[%s3464_s4 + $0xb0] sm:$0xff]   ;;  %v2813_v37 = vld [vmem:[%s3464_s4 + $0xb8] sm:$0xff]  }
 0x19f   :  { %v3290_v30 = vadd.f32 %v3241_v50, %v1573_v51 }
 0x1a0   :  { %v2310_v42 = vmul.f32 -1.442695, %v1606_v44  ;;  %v2311_v57 = vmul.f32 -1.442695, %v1609_v53  ;;  %2820 = vpow2.f32 %v2309_v52  ;;  %v3293_v63 = vadd.f32 %v3241_v50, %v1576_v55  ;;  %v3298_v50 = vld [vmem:[%s3461_s1] sm:$0xff] }
 0x1a1   :  { %2822 = vrcp.f32 %v1630_v34 }
 0x1a2   :  { %v2817_v0 = vpop.eup %2816  ;;  %2824 = vpow2.f32 %v2310_v42 }
 0x1a3   :  { %v1631_v47 = vadd.f32 1.0, %v2817_v0  ;;  %2826 = vpow2.f32 %v2311_v57 }
 0x1a4   :  { %v2819_v36 = vpop.eup %2818 }
 0x1a5   :  { %2828 = vrcp.f32 %v1631_v47  ;;  %v1632_v1 = vadd.f32 1.0, %v2819_v36 }
 0x1a7   :  { %2830 = vrcp.f32 %v1632_v1 }
 0x1aa   :  { %v2821_v48 = vpop.eup %2820 }
 0x1ab   :  { %v2823_v49 = vpop.eup %2822  ;;  %v1633_v43 = vadd.f32 1.0, %v2821_v48 }
 0x1ac   :  { %v2825_v2 = vpop.eup %2824  ;;  %v1648_v11 = vmul.f32 %v3298_v50, %v2823_v49 }
 0x1ad   :  { %v2827_v59 = vpop.eup %2826  ;;  %2832 = vrcp.f32 %v1633_v43  ;;  %v1634_v3 = vadd.f32 1.0, %v2825_v2 }
 0x1ae   :  { %v1635_v7 = vadd.f32 1.0, %v2827_v59 }
 0x1af   :  { %v2829_v60 = vpop.eup %2828  ;;  %2834 = vrcp.f32 %v1634_v3 }
 0x1b0   :  { %v1649_v6 = vmul.f32 %v3304_v12, %v2829_v60  ;;  %2836 = vrcp.f32 %v1635_v7 }
 0x1b1   :  { %v2831_v10 = vpop.eup %2830 }
 0x1b2   :  { %v1654_v17 = vpack.c.bf16 %v1649_v6, %v1648_v11  ;;  %v1650_v8 = vmul.f32 %v3321_v24, %v2831_v10  ;;  %v2336_v11 = vmul.f32 -1.442695, %v3248_v54  ;;  %v2337_v54 = vmul.f32 -1.442695, %v3262_v18 }
 0x1b3   :  { %v2340_v18 = vmul.f32 -1.442695, %v3290_v30 }
 0x1b4   :  { %2523 = vmatmul.mubr.bf16.vlgmr.msra.gmra.mrb[36].mxu1 %v1654_v17  ;;  %2551 = vmatmul.mubr.bf16.vlgmr.msra.gmra.mrb[36].mxu0 %v1654_v17  ;;  %2838 = vpow2.f32 %v2336_v11 }
 0x1b5   :  { %2563 = vmatpush3.bf16.msra.mxu1 %v2806_v16  ;;  %2526 = vmatprep.mubr.msk.bf16.mxu1 %vm2908_vm1, %v2907_v19  ;;  %2840 = vpow2.f32 %v2337_v54 }
 0x1b6   :  { %2564 = vmatprep.subr.bf16.mxu1 %v2907_v19  ;;  %2554 = vmatprep.mubr.msk.bf16.mxu0 %vm2908_vm1, %v2907_v19 }
 0x1b7   :  { %v2833_v23 = vpop.eup %2832 }
 0x1b8   :  { %v1651_v9 = vmul.f32 %v3327_v28, %v2833_v23 }
 0x1b9   :  { %2565 = vmatpush3.bf16.msra.mxu1 %v2807_v61  ;;  %v2835_v29 = vpop.eup %2834 }
 0x1ba   :  { %2566 = vmatprep.subr.bf16.mxu1 %v2907_v19  ;;  %v2837_v31 = vpop.eup %2836  ;;  %v1655_v32 = vpack.c.bf16 %v1651_v9, %v1650_v8  ;;  %v1652_v56 = vmul.f32 %v3337_v33, %v2835_v29 }
 0x1bb   :  { %v1653_v38 = vmul.f32 %v3343_v21, %v2837_v31 }
 0x1bc   :  { %2527 = vmatmul.mubr.bf16.gmra.mrb[40].mxu1 %v1655_v32  ;;  %2555 = vmatmul.mubr.bf16.gmra.mrb[40].mxu0 %v1655_v32 }
 0x1bd   :  { %2567 = vmatpush3.bf16.msra.mxu1 %v2808_v15  ;;  %2530 = vmatprep.mubr.msk.bf16.mxu1 %vm2908_vm1, %v2907_v19  ;;  %v1656_v4 = vpack.c.bf16 %v1653_v38, %v1652_v56 }
 0x1be   :  { %2568 = vmatprep.subr.bf16.mxu1 %v2907_v19  ;;  %2558 = vmatprep.mubr.msk.bf16.mxu0 %vm2908_vm1, %v2907_v19 }
 0x1c1   :  { %2569 = vmatpush3.bf16.msra.mxu1 %v2809_v5 }
 0x1c2   :  { %2570 = vmatprep.subr.bf16.mxu1 %v2907_v19 }
 0x1c4   :  { %2531 = vmatmul.mubr.bf16.gmra.mrb[44].mxu1 %v1656_v4  ;;  %2559 = vmatmul.mubr.bf16.gmra.mrb[44].mxu0 %v1656_v4 }
 0x1c5   :  { %2571 = vmatpush3.bf16.msra.mxu1 %v2810_v20  ;;  %2578 = vmatprep.mubr.msk.bf16.mxu1 %vm2908_vm1, %v2907_v19 }
 0x1c6   :  { %2572 = vmatprep.subr.bf16.mxu1 %v2907_v19 }
 0x1c9   :  { %2573 = vmatpush3.bf16.msra.mxu1 %v2811_v45 }
 0x1ca   :  { %2574 = vmatprep.subr.bf16.mxu1 %v2907_v19 }
 0x1cd   :  { %2575 = vmatpush3.bf16.msra.mxu1 %v2812_v46  ;;  %v2338_v46 = vmul.f32 -1.442695, %v3266_v27 }
 0x1ce   :  { %2576 = vmatprep.subr.bf16.mxu1 %v2907_v19 }
 0x1cf   :  { %2842 = vpow2.f32 %v2338_v46 }
 0x1d1   :  { %2577 = vmatpush3.bf16.msra.mxu1 %v2813_v37  ;;  %v2839_v37 = vpop.eup %2838 }
 0x1d4   :  { %2579 = vmatmul.mubr.bf16.vlgmr.msra.gmra.mrb[48].mxu1 %v1654_v17 }
 0x1d5   :  { %2582 = vmatprep.mubr.msk.bf16.mxu1 %vm2908_vm1, %v2907_v19 }
 0x1dc   :  { %2583 = vmatmul.mubr.bf16.gmra.mrb[52].mxu1 %v1655_v32 }
 0x1dd   :  { %2586 = vmatprep.mubr.msk.bf16.mxu1 %vm2908_vm1, %v2907_v19 }
 0x1e4   :  { %2587 = vmatmul.mubr.bf16.gmra.mrb[56].mxu1 %v1656_v4 }
 0x287   :  { %v1739_v62 = vpop.f32.mrb[36].mxu1  ;;  %v1856_v22 = vpop.f32.mrb[36].mxu0 }
 0x288   :  { %v2524_v25 = vpop.f32.mrb[37].mxu1  ;;  %v2552_v51 = vpop.f32.mrb[37].mxu0  ;;  %v1762_v44 = vrot.slane %v1739_v62, 7  ;;  %v2339_v62 = vmul.f32 -1.442695, %v3283_v26 }
 0x289   :  { %v1742_v34 = vpop.f32.mrb[38].mxu1  ;;  %v1859_v52 = vpop.f32.mrb[38].mxu0  ;;  %v2026_v25 = vadd.f32 1.0, %v2839_v37  ;;  %v2341_v51 = vmul.f32 -1.442695, %v3293_v63 }
 0x28a   :  { %v1763_v53 = vrot.slane %v1742_v34, 7  ;;  %v2525_v55 = vpop.f32.mrb[39].mxu1  ;;  %v2553_v42 = vpop.f32.mrb[39].mxu0  ;;  %2844 = vpow2.f32 %v2339_v62 }
 0x28b   :  { %2846 = vrcp.f32 %v2026_v25 }
 0x28c   :  { %v1772_v57 = vsel %vm734_vm0, %v1762_v44, %v1763_v53  ;;  %2848 = vpow2.f32 %v2340_v18 }
 0x28d   :  { %v3378_v0 = vadd.f32 %v1859_v52, %v1772_v57  ;;  %2850 = vpow2.f32 %v2341_v51 }
 0x28f   :  { %v1747_v47 = vpop.f32.mrb[40].mxu1  ;;  %v1864_v36 = vpop.f32.mrb[40].mxu0 }
 0x290   :  { %v1764_v1 = vrot.slane %v1747_v47, 7  ;;  %v2528_v19 = vpop.f32.mrb[41].mxu1  ;;  %v2556_v48 = vpop.f32.mrb[41].mxu0 }
 0x291   :  { %v1750_v49 = vpop.f32.mrb[42].mxu1  ;;  %v1867_v43 = vpop.f32.mrb[42].mxu0 }
 0x292   :  { %v1771_v2 = vsel %vm734_vm0, %v1763_v53, %v1764_v1  ;;  %v1765_v59 = vrot.slane %v1750_v49, 7  ;;  %v2529_v3 = vpop.f32.mrb[43].mxu1  ;;  %v2557_v60 = vpop.f32.mrb[43].mxu0 }
 0x293   :  { %v3382_v7 = vadd.f32 %v1864_v36, %v1771_v2 }
 0x294   :  { %v1770_v6 = vsel %vm734_vm0, %v1764_v1, %v1765_v59 }
 0x295   :  { %v3387_v16 = vadd.f32 %v1867_v43, %v1770_v6 }
 0x297   :  { %v1755_v17 = vpop.f32.mrb[44].mxu1  ;;  %v1872_v61 = vpop.f32.mrb[44].mxu0 }
 0x298   :  { %v1766_v10 = vrot.slane %v1755_v17, 7  ;;  %v2532_v23 = vpop.f32.mrb[45].mxu1  ;;  %v2560_v8 = vpop.f32.mrb[45].mxu0 }
 0x299   :  { %v1758_v9 = vpop.f32.mrb[46].mxu1  ;;  %v1875_v29 = vpop.f32.mrb[46].mxu0 }
 0x29a   :  { %v1769_v15 = vsel %vm734_vm0, %v1765_v59, %v1766_v10  ;;  %v1767_v31 = vrot.slane %v1758_v9, 7  ;;  %v2533_v32 = vpop.f32.mrb[47].mxu1  ;;  %v2561_v56 = vpop.f32.mrb[47].mxu0 }
 0x29b   :  { %v3392_v38 = vadd.f32 %v1872_v61, %v1769_v15 }
 0x29c   :  { %v1773_v5 = vsel %vm734_vm0, %v1767_v31, %v1762_v44  ;;  %v1768_v4 = vsel %vm734_vm0, %v1766_v10, %v1767_v31  ;;  %v2841_v44 = vpop.eup %2840 }
 0x29d   :  { %v1879_v20 = vadd.f32 %v1856_v22, %v1773_v5  ;;  %v3398_v45 = vadd.f32 %v1875_v29, %v1768_v4  ;;  %v2843_v42 = vpop.eup %2842  ;;  %v2027_v57 = vadd.f32 1.0, %v2841_v44 }
 0x29e   :  { %v2028_v30 = vadd.f32 1.0, %v2843_v42  ;;  %v2845_v48 = vpop.eup %2844 }
 0x29f   :  { %2852 = vrcp.f32 %v2027_v57  ;;  %v2847_v3 = vpop.eup %2846  ;;  %v2029_v6 = vadd.f32 1.0, %v2845_v48 }
 0x2a0   :  { %v2849_v11 = vpop.eup %2848  ;;  %v2056_v23 = vsub.f32 1.0, %v2847_v3 }
 0x2a1   :  { %v2851_v17 = vpop.eup %2850  ;;  %v2030_v8 = vadd.f32 1.0, %v2849_v11 }
 0x2a2   :  { %v2031_v15 = vadd.f32 1.0, %v2851_v17 }
 0x2a7   :  { %v1967_v34 = vpop.f32.mrb[48].mxu1 }
 0x2a8   :  { %v2580_v52 = vpop.f32.mrb[49].mxu1  ;;  %v1990_v53 = vrot.slane %v1967_v34, 1 }
 0x2a9   :  { %v1970_v22 = vpop.f32.mrb[50].mxu1  ;;  %v2853_v56 = vpop.eup %2852 }
 0x2aa   :  { %v1991_v55 = vrot.slane %v1970_v22, 1  ;;  %v2581_v27 = vpop.f32.mrb[51].mxu1  ;;  %v2057_v34 = vsub.f32 1.0, %v2853_v56 }
 0x2ac   :  { %v2000_v26 = vsel %vm1541_vm2, %v1990_v53, %v1991_v55  ;;  %v2063_v41 = vmul.f32 %v3304_v12, %v2057_v34 }
 0x2ad   :  { %v2002_v47 = vadd.f32 %v2000_v26, %v1879_v20 }
 0x2af   :  { %v2044_v36 = vadd.f32 %v2002_v47, %v3212_v58  ;;  %v1975_v63 = vpop.f32.mrb[52].mxu1 }
 0x2b0   :  { %v1992_v1 = vrot.slane %v1975_v63, 1  ;;  %v2584_v19 = vpop.f32.mrb[53].mxu1 }
 0x2b1   :  { %2854 = vtanh.f32 %v2044_v36  ;;  %v1978_v49 = vpop.f32.mrb[54].mxu1 }
 0x2b2   :  { %v1999_v43 = vsel %vm1541_vm2, %v1991_v55, %v1992_v1  ;;  %v1993_v2 = vrot.slane %v1978_v49, 1  ;;  %v2585_v59 = vpop.f32.mrb[55].mxu1  ;;  %2856 = vrcp.f32 %v2028_v30 }
 0x2b3   :  { %v2003_v60 = vadd.f32 %v1999_v43, %v3378_v0 }
 0x2b4   :  { %v1998_v58 = vsel %vm1541_vm2, %v1992_v1, %v1993_v2 }
 0x2b5   :  { %v2045_v61 = vadd.f32 %v2003_v60, %v3218_v14  ;;  %v2004_v10 = vadd.f32 %v1998_v58, %v3382_v7  ;;  %v2062_v7 = vmul.f32 %v3298_v50, %v2056_v23 }
 0x2b7   :  { %2858 = vtanh.f32 %v2045_v61  ;;  %v2046_v9 = vadd.f32 %v2004_v10, %v3220_v35  ;;  %v1983_v29 = vpop.f32.mrb[56].mxu1  ;;  %v59_v10 = vld [vmem:[%s3462_s2 + $0x28] sm:$0xff] }
 0x2b8   :  { %2860 = vrcp.f32 %v2029_v6  ;;  %v1994_v31 = vrot.slane %v1983_v29, 1  ;;  %v2588_v0 = vpop.f32.mrb[57].mxu1  ;;  %v58_v6 = vld [vmem:[%s3462_s2 + $0x20] sm:$0xff] }
 0x2b9   :  { %2862 = vtanh.f32 %v2046_v9  ;;  %v1986_v32 = vpop.f32.mrb[58].mxu1 }
 0x2ba   :  { %v1997_v54 = vsel %vm1541_vm2, %v1993_v2, %v1994_v31  ;;  %v1995_v5 = vrot.slane %v1986_v32, 1  ;;  %v2589_v14 = vpop.f32.mrb[59].mxu1  ;;  %2864 = vrcp.f32 %v2030_v8  ;;  %v57_v2 = vld [vmem:[%s3462_s2 + $0x18] sm:$0xff] }
 0x2bb   :  { %v2855_v4 = vpop.eup %2854  ;;  %v2005_v20 = vadd.f32 %v1997_v54, %v3387_v16  ;;  %2866 = vrcp.f32 %v2031_v15 }
 0x2bc   :  { %v2068_v35 = vmul.f32 %v2855_v4, %v2847_v3  ;;  %v1996_v46 = vsel %vm1541_vm2, %v1994_v31, %v1995_v5  ;;  %v2001_v37 = vsel %vm1541_vm2, %v1995_v5, %v1990_v53  ;;  %v2857_v62 = vpop.eup %2856 }
 0x2bd   :  { %v2047_v25 = vadd.f32 %v2005_v20, %v3228_v13  ;;  %v2006_v18 = vadd.f32 %v1996_v46, %v3392_v38  ;;  %v2007_v51 = vadd.f32 %v2001_v37, %v3398_v45  ;;  %v2058_v44 = vsub.f32 1.0, %v2857_v62  ;;  %v54_v38 = vld [vmem:[%s3462_s2] sm:$0xff]  ;;  %v55_v45 = vld [vmem:[%s3462_s2 + $0x8] sm:$0xff] }
 0x2be   :  { %v2074_v52 = vadd.f32 %v2068_v35, %v2062_v7 }
 0x2bf   :  { %2868 = vtanh.f32 %v2047_v25  ;;  %v2048_v50 = vadd.f32 %v2006_v18, %v3230_v39  ;;  %v2049_v16 = vadd.f32 %v2007_v51, %v3232_v40  ;;  %v2064_v40 = vmul.f32 %v3321_v24, %v2058_v44  ;;  %v56_v24 = vld [vmem:[%s3462_s2 + $0x10] sm:$0xff] }
 0x2c0   :  { %v2080_v47 = vmul.f32 %v2074_v52, %v54_v38 }
 0x2c1   :  { %v2859_v22 = vpop.eup %2858  ;;  %2870 = vtanh.f32 %v2048_v50 }
 0x2c2   :  { %v2861_v55 = vpop.eup %2860  ;;  %v2069_v53 = vmul.f32 %v2859_v22, %v2853_v56  ;;  %2872 = vtanh.f32 %v2049_v16 }
 0x2c3   :  { %v2863_v13 = vpop.eup %2862  ;;  %v2059_v26 = vsub.f32 1.0, %v2861_v55 }
 0x2c4   :  { %v2075_v39 = vadd.f32 %v2069_v53, %v2063_v41  ;;  %v2070_v27 = vmul.f32 %v2863_v13, %v2857_v62  ;;  %v2865_v42 = vpop.eup %2864 }
 0x2c5   :  { %v2867_v57 = vpop.eup %2866  ;;  %v2060_v36 = vsub.f32 1.0, %v2865_v42  ;;  %v2065_v48 = vmul.f32 %v3327_v28, %v2059_v26 }
 0x2c6   :  { %v2081_v12 = vmul.f32 %v2075_v39, %v55_v45  ;;  %v2076_v30 = vadd.f32 %v2070_v27, %v2064_v40  ;;  %v2061_v19 = vsub.f32 1.0, %v2867_v57 }
 0x2c7   :  { %v2066_v60 = vmul.f32 %v3337_v33, %v2060_v36 }
 0x2c8   :  { %v2357_v63 = vpack.c.bf16 %v2081_v12, %v2080_v47  ;;  %v2067_v28 = vmul.f32 %v3343_v21, %v2061_v19  ;;  %v2082_v17 = vmul.f32 %v2076_v30, %v56_v24 }
 0x2c9   :  { %v2869_v1 = vpop.eup %2868 }
 0x2ca   :  { %2358 = vst [vmem:[%s3466_s6] sm:$0xff] %v2357_v63   ;;  %v2071_v49 = vmul.f32 %v2869_v1, %v2861_v55 }
 0x2cb   :  { %v2871_v43 = vpop.eup %2870 }
 0x2cc   :  { %v2873_v59 = vpop.eup %2872  ;;  %v2077_v3 = vadd.f32 %v2071_v49, %v2065_v48  ;;  %v2072_v11 = vmul.f32 %v2871_v43, %v2865_v42 }
 0x2cd   :  { %v2073_v58 = vmul.f32 %v2873_v59, %v2867_v57 }
 0x2ce   :  { %v2083_v61 = vmul.f32 %v2077_v3, %v57_v2  ;;  %v2078_v23 = vadd.f32 %v2072_v11, %v2066_v60 }
 0x2cf   :  { %v2079_v8 = vadd.f32 %v2073_v58, %v2067_v28 }
 0x2d0   :  { %v2362_v9 = vpack.c.bf16 %v2083_v61, %v2082_v17  ;;  %v2084_v29 = vmul.f32 %v2078_v23, %v58_v6 }
 0x2d1   :  { %v2085_v15 = vmul.f32 %v2079_v8, %v59_v10 }
 0x2d2   :  { %2369 = vst [vmem:[%s3466_s6 + $0x8] sm:$0xff] %v2362_v9  }
 0x2d3   :  { %v2367_v33 = vpack.c.bf16 %v2085_v15, %v2084_v29 }
 0x2d5   :  { %2370 = vst [vmem:[%s3466_s6 + $0x10] sm:$0xff] %v2367_v33  }
 0x2d6   :  { %2126 = vsyncpa [#allocation4], 1 }

</bundles_post_ra>
